<compile_context>
chip_gen: v6e
topology: v6e:2x2x1
jax: 0.10.0
libtpu: 0.0.40
codegen_flags: <defaults>
</compile_context>

<pallas_src>
import jax
import jax.numpy as jnp
from jax.experimental import pallas as pl
from jax.experimental.pallas import tpu as pltpu

H_IN = 1536      # dense input  (= 2 * 768)
H_MID = 768      # dense output
H_OUT = 2        # out_proj output (logical)
N_PAD = 128      # lane-dense padded output width
VMEM_LIMIT_BYTES = 32 * 1024 * 1024   # fits every generation's physical VMEM


def _head_kernel(x_ref, w1_ref, b1_ref, w2_ref, b2_ref, o_ref):
    # Dropout layers are identity at inference time (p=0.5 only in training).
    # TODO(synk): training-mode dropout (pltpu PRNG) not emitted.
    h = jnp.dot(x_ref[...], w1_ref[...],
                preferred_element_type=jnp.float32)           # bf16 MXU, f32 acc
    h = jnp.tanh(h + b1_ref[...])                             # (tm, 768) f32
    o = jnp.dot(h.astype(jnp.bfloat16), w2_ref[...],
                preferred_element_type=jnp.float32)           # bf16 MXU, f32 acc
    o_ref[...] = o + b2_ref[...]                              # (tm, 128) f32


def _round_up(n, m):
    return (n + m - 1) // m * m


def _choose_tiling(m, block_m):
    """Balanced row tiles: near-equal chunks, each a multiple of 8 sublanes."""
    n_tiles = max(1, -(-m // block_m))
    # On dual-TensorCore parts (v7x) give the "parallel" grid axis >= 4 steps,
    # provided each tile stays >= 256 rows so the ~0.35us per-step overhead
    # remains amortized.  Neutral on single-core v5e/v6e.
    if m >= 4 * 256:
        n_tiles = max(n_tiles, 4)
    tm = _round_up(-(-m // n_tiles), 8)
    return tm, tm * n_tiles


def prepare_head_params(w1, b1, w2, b2):
    """One-time (model init) preprocessing: bf16 W1, bf16 lane-padded W2, f32
    biases.  Hoisted out of the per-call wrapper so HBM already holds the
    kernel-ready layouts."""
    w1_bf = w1.astype(jnp.bfloat16)                                    # (1536, 768)
    b1_f = b1.reshape(1, H_MID).astype(jnp.float32)                    # (1, 768)
    w2_p = jnp.zeros((H_MID, N_PAD), jnp.bfloat16).at[:, :H_OUT].set(
        w2.astype(jnp.bfloat16))                                       # (768, 128)
    b2_p = jnp.zeros((1, N_PAD), jnp.float32).at[:, :H_OUT].set(
        b2.reshape(1, H_OUT).astype(jnp.float32))                      # (1, 128)
    return w1_bf, b1_f, w2_p, b2_p


def roberta_classification_head(features, params, block_m=1024):
    """features: (B, S, 768); params from prepare_head_params().
    Returns (B//2, 2) f32 logits."""
    w1_bf, b1_f, w2_p, b2_p = params
    B, S, H = features.shape
    assert 2 * H == H_IN and B % 2 == 0
    M = B // 2

    # Fused CLS slice + bf16 cast + pair-reshape (+ tail pad), all in bf16 so
    # XLA never writes an f32 copy of x to HBM.
    x = features[:, 0, :].astype(jnp.bfloat16).reshape(M, H_IN)
    tm, m_pad = _choose_tiling(M, block_m)
    if m_pad != M:
        x = jnp.pad(x, ((0, m_pad - M), (0, 0)))               # ragged tail (bf16)
    n_tiles = m_pad // tm

    resident = dict(pipeline_mode=pl.Buffered(buffer_count=1))  # fetched once

    cost = pl.CostEstimate(
        flops=2 * m_pad * (H_IN * H_MID + H_MID * N_PAD),
        transcendentals=m_pad * H_MID,
        bytes_accessed=(m_pad * H_IN * 2            # x (bf16)
                        + H_IN * H_MID * 2          # W1 (bf16)
                        + H_MID * N_PAD * 2         # W2 padded (bf16)
                        + H_MID * 4 + N_PAD * 4     # biases (f32)
                        + m_pad * N_PAD * 4),       # out (f32)
    )

    out = pl.pallas_call(
        _head_kernel,
        out_shape=jax.ShapeDtypeStruct((m_pad, N_PAD), jnp.float32),
        grid=(n_tiles,),
        in_specs=[
            pl.BlockSpec((tm, H_IN), lambda i: (i, 0)),                   # x tile (double-buffered)
            pl.BlockSpec((H_IN, H_MID), lambda i: (0, 0), **resident),    # W1 bf16 (resident)
            pl.BlockSpec((1, H_MID), lambda i: (0, 0), **resident),       # b1 f32  (resident)
            pl.BlockSpec((H_MID, N_PAD), lambda i: (0, 0), **resident),   # W2 bf16 padded (resident)
            pl.BlockSpec((1, N_PAD), lambda i: (0, 0), **resident),       # b2 f32 padded  (resident)
        ],
        out_specs=pl.BlockSpec((tm, N_PAD), lambda i: (i, 0)),
        compiler_params=pltpu.CompilerParams(
            dimension_semantics=("parallel",),
            vmem_limit_bytes=VMEM_LIMIT_BYTES),
        cost_estimate=cost,
    )(x, w1_bf, b1_f, w2_p, b2_p)

    return out[:M, :H_OUT]


if __name__ == "__main__":
    key = jax.random.PRNGKey(0)
    k_feat, k_w1, k_b1, k_w2, k_b2 = jax.random.split(key, 5)

    # Small example input consistent with the module: batch=4 (must be even),
    # seq=8, hidden=768 (fixed by the Linear(1536, 768) in __init__).
    B, S, H = 4, 8, 768
    features = jax.random.normal(k_feat, (B, S, H), dtype=jnp.float32)

    # Deterministic parameters, stored as (in_features, out_features) so the
    # forward is x @ W + b (same math as torch's x @ W^T + b).
    w1 = 0.02 * jax.random.normal(k_w1, (H_IN, H_MID), dtype=jnp.float32)
    b1 = 0.02 * jax.random.normal(k_b1, (1, H_MID), dtype=jnp.float32)
    w2 = 0.02 * jax.random.normal(k_w2, (H_MID, H_OUT), dtype=jnp.float32)
    b2 = 0.02 * jax.random.normal(k_b2, (1, H_OUT), dtype=jnp.float32)

    # One-time weight preprocessing (hoisted out of the per-call path).
    params = prepare_head_params(w1, b1, w2, b2)

    head = jax.jit(roberta_classification_head)
    out = jax.block_until_ready(head(features, params))

    # Full-f32 reference; kernel uses bf16 MXU operands (f32 accumulate), so
    # compare with a relaxed tolerance.
    x_ref = features[:, 0, :].reshape(-1, H_IN)
    ref = jnp.tanh(x_ref @ w1 + b1) @ w2 + b2
    assert out.shape == (B // 2, H_OUT)
    assert jnp.allclose(out, ref, atol=2e-2, rtol=2e-2), (
        float(jnp.max(jnp.abs(out - ref))))

    print("KERNEL_OK")
</pallas_src>

<mosaic_0001>
module attributes {stable_mosaic.version = 11 : i64} {
  func.func @_head_kernel(%arg0: i32, %arg1: memref<8x1536xbf16, #tpu.memory_space<vmem>>, %arg2: memref<1536x768xbf16, #tpu.memory_space<vmem>>, %arg3: memref<1x768xf32, #tpu.memory_space<vmem>>, %arg4: memref<768x128xbf16, #tpu.memory_space<vmem>>, %arg5: memref<1x128xf32, #tpu.memory_space<vmem>>, %arg6: memref<8x128xf32, #tpu.memory_space<vmem>>) attributes {dimension_semantics = [#tpu.dimension_semantics<parallel>], iteration_bounds = array<i64: 1>, scalar_prefetch = 0 : i64, scratch_operands = 0 : i64, tpu.core_type = #tpu.core_type<tc>, window_params = [{transform_indices = @transform_0, window_bounds = array<i64: 8, 1536>}, {pipeline_mode = #tpu.pipeline_mode<synchronous>, transform_indices = @transform_1, window_bounds = array<i64: 1536, 768>}, {pipeline_mode = #tpu.pipeline_mode<synchronous>, transform_indices = @transform_2, window_bounds = array<i64: 1, 768>}, {pipeline_mode = #tpu.pipeline_mode<synchronous>, transform_indices = @transform_3, window_bounds = array<i64: 768, 128>}, {pipeline_mode = #tpu.pipeline_mode<synchronous>, transform_indices = @transform_4, window_bounds = array<i64: 1, 128>}, {transform_indices = @transform_5, window_bounds = array<i64: 8, 128>}]} {
    %c0 = arith.constant 0 : index
    %c0_0 = arith.constant 0 : index
    %0 = vector.load %arg1[%c0, %c0_0] : memref<8x1536xbf16, #tpu.memory_space<vmem>>, vector<8x1536xbf16>
    %c0_1 = arith.constant 0 : index
    %c0_2 = arith.constant 0 : index
    %1 = vector.load %arg2[%c0_1, %c0_2] : memref<1536x768xbf16, #tpu.memory_space<vmem>>, vector<1536x768xbf16>
    %cst = arith.constant dense<0.000000e+00> : vector<8x768xf32>
    %2 = tpu.matmul %0, %1, %cst {dimension_numbers = #tpu.dot_dimension_numbers<[1], [0], [0], [1], [0, 0, 1, 1], [], []>} : vector<8x1536xbf16>, vector<1536x768xbf16>, vector<8x768xf32> -> vector<8x768xf32>
    %c0_3 = arith.constant 0 : index
    %c0_4 = arith.constant 0 : index
    %3 = vector.load %arg3[%c0_3, %c0_4] : memref<1x768xf32, #tpu.memory_space<vmem>>, vector<1x768xf32>
    %4 = vector.broadcast %3 : vector<1x768xf32> to vector<8x768xf32>
    %5 = arith.addf %2, %4 : vector<8x768xf32>
    %6 = math.tanh %5 : vector<8x768xf32>
    %7 = arith.truncf %6 : vector<8x768xf32> to vector<8x768xbf16>
    %c0_5 = arith.constant 0 : index
    %c0_6 = arith.constant 0 : index
    %8 = vector.load %arg4[%c0_5, %c0_6] : memref<768x128xbf16, #tpu.memory_space<vmem>>, vector<768x128xbf16>
    %cst_7 = arith.constant dense<0.000000e+00> : vector<8x128xf32>
    %9 = tpu.matmul %7, %8, %cst_7 {dimension_numbers = #tpu.dot_dimension_numbers<[1], [0], [0], [1], [0, 0, 1, 1], [], []>} : vector<8x768xbf16>, vector<768x128xbf16>, vector<8x128xf32> -> vector<8x128xf32>
    %c0_8 = arith.constant 0 : index
    %c0_9 = arith.constant 0 : index
    %10 = vector.load %arg5[%c0_8, %c0_9] : memref<1x128xf32, #tpu.memory_space<vmem>>, vector<1x128xf32>
    %11 = vector.broadcast %10 : vector<1x128xf32> to vector<8x128xf32>
    %12 = arith.addf %9, %11 : vector<8x128xf32>
    %c0_10 = arith.constant 0 : index
    %c0_11 = arith.constant 0 : index
    %13 = vector.load %arg6[%c0_10, %c0_11] : memref<8x128xf32, #tpu.memory_space<vmem>>, vector<8x128xf32>
    tpu.vector_store %arg6[%c0_10, %c0_11], %12 {strides = array<i32>} : memref<8x128xf32, #tpu.memory_space<vmem>>, vector<8x128xf32>,
    return
  }
  func.func @transform_0(%arg0: i32) -> (i32, i32) {
    %c0_i32 = arith.constant 0 : i32
    %c0_i32_0 = arith.constant 0 : i32
    return %arg0, %c0_i32 : i32, i32
  }
  func.func @transform_1(%arg0: i32) -> (i32, i32) {
    %c0_i32 = arith.constant 0 : i32
    %c0_i32_0 = arith.constant 0 : i32
    %c0_i32_1 = arith.constant 0 : i32
    return %c0_i32, %c0_i32_0 : i32, i32
  }
  func.func @transform_2(%arg0: i32) -> (i32, i32) {
    %c0_i32 = arith.constant 0 : i32
    %c0_i32_0 = arith.constant 0 : i32
    %c0_i32_1 = arith.constant 0 : i32
    return %c0_i32, %c0_i32_0 : i32, i32
  }
  func.func @transform_3(%arg0: i32) -> (i32, i32) {
    %c0_i32 = arith.constant 0 : i32
    %c0_i32_0 = arith.constant 0 : i32
    %c0_i32_1 = arith.constant 0 : i32
    return %c0_i32, %c0_i32_0 : i32, i32
  }
  func.func @transform_4(%arg0: i32) -> (i32, i32) {
    %c0_i32 = arith.constant 0 : i32
    %c0_i32_0 = arith.constant 0 : i32
    %c0_i32_1 = arith.constant 0 : i32
    return %c0_i32, %c0_i32_0 : i32, i32
  }
  func.func @transform_5(%arg0: i32) -> (i32, i32) {
    %c0_i32 = arith.constant 0 : i32
    %c0_i32_0 = arith.constant 0 : i32
    return %arg0, %c0_i32 : i32, i32
  }
}

</mosaic_0001>

<bundles_post_ra>
// kernel: roberta_classification_head.1
= control target key start
LH: loop header
LB: loop body
LE: loop exit
PB: predicated region body
PF: predicated region fallthrough
CT: control target
= control target key end

     0   :  { %10 = vsyncpa [#allocation3], 0  ;;  %s6813_s0 = inlined_call_operand.vmem [shape: bf16[8,1536], index: 0, kind: input, shape index: {}]   ;;  %s6814_s1 = inlined_call_operand.hbm [shape: bf16[1536,768], index: 1, kind: input, shape index: {}]   ;;  %s6815_s2 = inlined_call_operand.hbm [shape: f32[1,768], index: 2, kind: input, shape index: {}]   ;;  %s6816_s3 = inlined_call_operand.hbm [shape: bf16[768,128], index: 3, kind: input, shape index: {}]   ;;  %s6817_s4 = inlined_call_operand.hbm [shape: f32[1,128], index: 4, kind: input, shape index: {}]   ;;  %s6818_s5 = inlined_call_operand.vmem [shape: f32[8,128], index: 5, kind: output, shape index: {}]  }
   0x1   :  { %11 = vsyncpa [#allocation5], 0 }
   0x2   :  { %12 = vsyncpa [#allocation8], 0  ;;  %s6611_s18 = smov [#allocation4]   ;;  %s6612_s20 = smov [#allocation2]  }
   0x3   :  { %s33_s19 = sshll.u32 %s6611_s18, 4  ;;  %s20_s21 = sshll.u32 %s6612_s20, 4  ;;  %s34_s19 = int_to_ptr.vmem [resolvable:$true] %s33_s19  ;;  %s21_s21 = int_to_ptr.vmem [resolvable:$true] %s20_s21 }
   0x4   :  { %s6533_s22 = scalar_lea.vmem %s34_s19, 96  ;;  %p6538_p1 = scmp.lt.s32.totalorder %s34_s19, %s34_s19 }
   0x5   :  { %p6534_p0 = scmp.ne.s32.totalorder %s34_s19, %s6533_s22  ;;  %p6539_p2 = scmp.lt.s32.totalorder %s6533_s22, %s6533_s22 }
   0x7   :  { %p6540_p3 = por %p6539_p2, %p6538_p1 }
   0x9   :  { %p6541_p4 = pnand %p6540_p3, %p6534_p0 }
   0xb   :  { %6544 = shalt.err (!%p6541_p4)
}
   0xc   :  { %36 = dma.hbm_to_vmem [thread:$0]  %s6815_s2, 96, %s34_s19, [#allocation5]  }
   0xd   :  { %s6553_s25 = scalar_lea.vmem %s21_s21, 73728  ;;  %p6558_p6 = scmp.lt.s32.totalorder %s21_s21, %s21_s21 }
   0xe   :  { %p6554_p5 = scmp.ne.s32.totalorder %s21_s21, %s6553_s25  ;;  %p6559_p7 = scmp.lt.s32.totalorder %s6553_s25, %s6553_s25 }
  0x10   :  { %p6560_p8 = por %p6559_p7, %p6558_p6 }
  0x12   :  { %p6561_p9 = pnand %p6560_p8, %p6554_p5 }
  0x14   :  { %6564 = shalt.err (!%p6561_p9)
}
  0x15   :  { %s6613_s26 = smov 384   ;;  %s6614_s27 = smov 24  }
  0x16   :  { %26 = dma.hbm_to_vmem [thread:$0]  %s6814_s1, 73728, %s21_s21, [#allocation3], %s6613_s26, %s6613_s26, %s6614_s27  }
  0x17   :  { %s6615_s30 = smov [#allocation6]  }
  0x18   :  { %s42_s6 = sshll.u32 %s6615_s30, 4  ;;  %s43_s6 = int_to_ptr.vmem [resolvable:$true] %s42_s6 }
  0x19   :  { %s6573_s7 = scalar_lea.vmem %s43_s6, 6144  ;;  %p6578_p11 = scmp.lt.s32.totalorder %s43_s6, %s43_s6 }
  0x1a   :  { %p6574_p10 = scmp.ne.s32.totalorder %s43_s6, %s6573_s7  ;;  %p6579_p12 = scmp.lt.s32.totalorder %s6573_s7, %s6573_s7 }
  0x1c   :  { %p6580_p13 = por %p6579_p12, %p6578_p11 }
  0x1e   :  { %p6581_p0 = pnand %p6580_p13, %p6574_p10 }
  0x20   :  { %6584 = shalt.err (!%p6581_p0)
}
  0x21   :  { %s6616_s2 = smov 64   ;;  %s6617_s8 = smov 4  }
  0x22   :  { %48 = dma.hbm_to_vmem [thread:$0]  %s6816_s3, 6144, %s43_s6, [#allocation5], %s6616_s2, %s6616_s2, %s6617_s8  }
  0x23   :  { %s6618_s11 = smov [#allocation7]  }
  0x24   :  { %s55_s12 = sshll.u32 %s6618_s11, 4  ;;  %s56_s12 = int_to_ptr.vmem [resolvable:$true] %s55_s12 }
  0x25   :  { %s6593_s1 = scalar_lea.vmem %s56_s12, 16  ;;  %s6597_s13 = scalar_lea.vmem %s56_s12, 32 }
  0x26   :  { %p6594_p1 = scmp.ne.s32.totalorder %s56_s12, %s6593_s1  ;;  %p6598_p2 = scmp.lt.s32.totalorder %s56_s12, %s56_s12 }
  0x27   :  { %p6599_p3 = scmp.lt.s32.totalorder %s6597_s13, %s6593_s1 }
  0x29   :  { %p6600_p4 = por %p6599_p3, %p6598_p2 }
  0x2b   :  { %p6601_p5 = pnand %p6600_p4, %p6594_p1 }
  0x2d   :  { %6604 = shalt.err (!%p6601_p5)
}
  0x2e   :  { %58 = dma.hbm_to_vmem [thread:$0]  %s6817_s4, 16, %s56_s12, [#allocation8]  }
  0x2f   :  { %6605 = dma.done.wait [#allocation3], 73728  }
  0x30   :  { %6606 = vsyncadd [#allocation3], 4294893568 }
  0x31   :  { %6607 = dma.done.wait [#allocation5], 6240  }
  0x32   :  { %6608 = vsyncadd [#allocation5], 4294961056 }
  0x33   :  { %6609 = dma.done.wait [#allocation8], 16  }
  0x34   :  { %6610 = vsyncadd [#allocation8], 4294967280  ;;  %v5588_v0 = vld [vmem:[#allocation2 + $0x154] ss:$24 sps:$4 sm:$0xff]   ;;  %v5592_v2 = vld [vmem:[#allocation2 + $0x150] ss:$24 sps:$4 sm:$0xff]  }
  0x35   :  { %v5590_v1 = vld [vmem:[#allocation2 + $0x454] ss:$24 sps:$4 sm:$0xff]   ;;  %3608 = vmatprep.subr.bf16.mxu0 %v5588_v0  ;;  %v5593_v3 = vld [vmem:[#allocation2 + $0x450] ss:$24 sps:$4 sm:$0xff]   ;;  %v5594_v4 = vld [vmem:[#allocation2 + $0x124] ss:$24 sps:$4 sm:$0xff]  }
  0x36   :  { %3649 = vmatprep.subr.bf16.mxu1 %v5590_v1  ;;  %3609 = vmatpush1.bf16.msra.mxu0 %v5592_v2  ;;  %v5596_v5 = vld [vmem:[#allocation2 + $0x424] ss:$24 sps:$4 sm:$0xff]   ;;  %v5598_v6 = vld [vmem:[#allocation2 + $0x120] ss:$24 sps:$4 sm:$0xff]   ;;  %v5600_v8 = vld [vmem:[#allocation2 + $0xf4] ss:$24 sps:$4 sm:$0xff]  }
  0x37   :  { %3650 = vmatpush1.bf16.msra.mxu1 %v5593_v3  ;;  %3610 = vmatprep.subr.bf16.mxu0 %v5594_v4  ;;  %v5599_v7 = vld [vmem:[#allocation2 + $0x420] ss:$24 sps:$4 sm:$0xff]   ;;  %v5602_v9 = vld [vmem:[#allocation2 + $0x3f4] ss:$24 sps:$4 sm:$0xff]   ;;  %v5604_v10 = vld [vmem:[#allocation2 + $0xf0] ss:$24 sps:$4 sm:$0xff]  }
  0x38   :  { %3651 = vmatprep.subr.bf16.mxu1 %v5596_v5  ;;  %v5605_v11 = vld [vmem:[#allocation2 + $0x3f0] ss:$24 sps:$4 sm:$0xff]   ;;  %v5606_v12 = vld [vmem:[#allocation2 + $0xc4] ss:$24 sps:$4 sm:$0xff]   ;;  %v5610_v14 = vld [vmem:[#allocation2 + $0xc0] ss:$24 sps:$4 sm:$0xff]  }
  0x39   :  { %v5608_v13 = vld [vmem:[#allocation2 + $0x3c4] ss:$24 sps:$4 sm:$0xff]   ;;  %v5611_v15 = vld [vmem:[#allocation2 + $0x3c0] ss:$24 sps:$4 sm:$0xff]   ;;  %v5612_v16 = vld [vmem:[#allocation2 + $0x94] ss:$24 sps:$4 sm:$0xff]  }
  0x3a   :  { %3611 = vmatpush1.bf16.msra.mxu0 %v5598_v6  ;;  %v5614_v17 = vld [vmem:[#allocation2 + $0x394] ss:$24 sps:$4 sm:$0xff]   ;;  %v5616_v18 = vld [vmem:[#allocation2 + $0x90] ss:$24 sps:$4 sm:$0xff]   ;;  %v5618_v20 = vld [vmem:[#allocation2 + $0x64] ss:$24 sps:$4 sm:$0xff]  }
  0x3b   :  { %3652 = vmatpush1.bf16.msra.mxu1 %v5599_v7  ;;  %3612 = vmatprep.subr.bf16.mxu0 %v5600_v8  ;;  %v5617_v19 = vld [vmem:[#allocation2 + $0x390] ss:$24 sps:$4 sm:$0xff]   ;;  %v5620_v21 = vld [vmem:[#allocation2 + $0x364] ss:$24 sps:$4 sm:$0xff]   ;;  %v5622_v22 = vld [vmem:[#allocation2 + $0x60] ss:$24 sps:$4 sm:$0xff]  }
  0x3c   :  { %3653 = vmatprep.subr.bf16.mxu1 %v5602_v9  ;;  %v5623_v23 = vld [vmem:[#allocation2 + $0x360] ss:$24 sps:$4 sm:$0xff]   ;;  %v5624_v24 = vld [vmem:[#allocation2 + $0x34] ss:$24 sps:$4 sm:$0xff]   ;;  %v5628_v26 = vld [vmem:[#allocation2 + $0x30] ss:$24 sps:$4 sm:$0xff]  }
  0x3d   :  { %v5626_v25 = vld [vmem:[#allocation2 + $0x334] ss:$24 sps:$4 sm:$0xff]   ;;  %v5629_v27 = vld [vmem:[#allocation2 + $0x330] ss:$24 sps:$4 sm:$0xff]   ;;  %v5630_v28 = vld [vmem:[#allocation2 + $0x4] ss:$24 sps:$4 sm:$0xff]  }
  0x3e   :  { %3613 = vmatpush1.bf16.msra.mxu0 %v5604_v10  ;;  %v5632_v29 = vld [vmem:[#allocation2 + $0x304] ss:$24 sps:$4 sm:$0xff]   ;;  %v5634_v30 = vld [vmem:[#allocation2] ss:$24 sps:$4 sm:$0xff]   ;;  %v5636_v32 = vld [vmem:[#allocation2 + $0x2d4] ss:$24 sps:$4 sm:$0xff]  }
  0x3f   :  { %3654 = vmatpush1.bf16.msra.mxu1 %v5605_v11  ;;  %3614 = vmatprep.subr.bf16.mxu0 %v5606_v12  ;;  %v5635_v31 = vld [vmem:[#allocation2 + $0x300] ss:$24 sps:$4 sm:$0xff]   ;;  %v5638_v33 = vld [vmem:[#allocation2 + $0x5d4] ss:$24 sps:$4 sm:$0xff]   ;;  %v5640_v34 = vld [vmem:[#allocation2 + $0x2d0] ss:$24 sps:$4 sm:$0xff]  }
  0x40   :  { %3655 = vmatprep.subr.bf16.mxu1 %v5608_v13  ;;  %v5641_v35 = vld [vmem:[#allocation2 + $0x5d0] ss:$24 sps:$4 sm:$0xff]   ;;  %v5642_v36 = vld [vmem:[#allocation2 + $0x2a4] ss:$24 sps:$4 sm:$0xff]   ;;  %v5646_v38 = vld [vmem:[#allocation2 + $0x2a0] ss:$24 sps:$4 sm:$0xff]  }
  0x41   :  { %v5644_v37 = vld [vmem:[#allocation2 + $0x5a4] ss:$24 sps:$4 sm:$0xff]   ;;  %v5647_v39 = vld [vmem:[#allocation2 + $0x5a0] ss:$24 sps:$4 sm:$0xff]   ;;  %v5648_v40 = vld [vmem:[#allocation2 + $0x274] ss:$24 sps:$4 sm:$0xff]  }
  0x42   :  { %3615 = vmatpush1.bf16.msra.mxu0 %v5610_v14  ;;  %v5650_v41 = vld [vmem:[#allocation2 + $0x574] ss:$24 sps:$4 sm:$0xff]   ;;  %v5652_v42 = vld [vmem:[#allocation2 + $0x270] ss:$24 sps:$4 sm:$0xff]   ;;  %v5654_v44 = vld [vmem:[#allocation2 + $0x244] ss:$24 sps:$4 sm:$0xff]  }
  0x43   :  { %3656 = vmatpush1.bf16.msra.mxu1 %v5611_v15  ;;  %3616 = vmatprep.subr.bf16.mxu0 %v5612_v16  ;;  %v5653_v43 = vld [vmem:[#allocation2 + $0x570] ss:$24 sps:$4 sm:$0xff]   ;;  %v5656_v45 = vld [vmem:[#allocation2 + $0x544] ss:$24 sps:$4 sm:$0xff]   ;;  %v5658_v49 = vld [vmem:[#allocation2 + $0x240] ss:$24 sps:$4 sm:$0xff]  }
  0x44   :  { %3657 = vmatprep.subr.bf16.mxu1 %v5614_v17  ;;  %v72_v46 = vld [vmem:[%s6813_s0] sm:$0xff]  ;;  %v73_v48 = vld [vmem:[%s6813_s0 + $0x8] sm:$0xff] }
  0x45   :  { %v6664_v47 = vcombine.high %v72_v46, %v72_v46  ;;  %v5659_v50 = vld [vmem:[#allocation2 + $0x540] ss:$24 sps:$4 sm:$0xff]   ;;  %v6669_v51 = vcombine.high %v73_v48, %v73_v48  ;;  %v5660_v52 = vld [vmem:[#allocation2 + $0x214] ss:$24 sps:$4 sm:$0xff]   ;;  %v5664_v54 = vld [vmem:[#allocation2 + $0x210] ss:$24 sps:$4 sm:$0xff]   ;;  %v6673_v6 = vcombine.low %v72_v46, %v72_v46  ;;  %v6675_v7 = vcombine.low %v73_v48, %v73_v48 }
  0x46   :  { %3617 = vmatpush1.bf16.msra.mxu0 %v5616_v18  ;;  %v5662_v53 = vld [vmem:[#allocation2 + $0x514] ss:$24 sps:$4 sm:$0xff]   ;;  %v5665_v55 = vld [vmem:[#allocation2 + $0x510] ss:$24 sps:$4 sm:$0xff]   ;;  %v5666_v56 = vld [vmem:[#allocation2 + $0x1e4] ss:$24 sps:$4 sm:$0xff]  }
  0x47   :  { %3658 = vmatpush1.bf16.msra.mxu1 %v5617_v19  ;;  %3618 = vmatprep.subr.bf16.mxu0 %v5618_v20  ;;  %v5668_v57 = vld [vmem:[#allocation2 + $0x4e4] ss:$24 sps:$4 sm:$0xff]   ;;  %v5670_v58 = vld [vmem:[#allocation2 + $0x1e0] ss:$24 sps:$4 sm:$0xff]   ;;  %v5672_v60 = vld [vmem:[#allocation2 + $0x1b4] ss:$24 sps:$4 sm:$0xff]  }
  0x48   :  { %3659 = vmatprep.subr.bf16.mxu1 %v5620_v21  ;;  %3640 = vmatprep.mubr.bf16.mxu0 %v6664_v47  ;;  %v5671_v59 = vld [vmem:[#allocation2 + $0x4e0] ss:$24 sps:$4 sm:$0xff]   ;;  %v5674_v61 = vld [vmem:[#allocation2 + $0x4b4] ss:$24 sps:$4 sm:$0xff]   ;;  %v5676_v62 = vld [vmem:[#allocation2 + $0x1b0] ss:$24 sps:$4 sm:$0xff]  }
  0x49   :  { %3681 = vmatprep.mubr.bf16.mxu1 %v6669_v51  ;;  %v5677_v63 = vld [vmem:[#allocation2 + $0x4b0] ss:$24 sps:$4 sm:$0xff]   ;;  %v5678_v0 = vld [vmem:[#allocation2 + $0x184] ss:$24 sps:$4 sm:$0xff]   ;;  %v5682_v2 = vld [vmem:[#allocation2 + $0x180] ss:$24 sps:$4 sm:$0xff]  }
  0x4a   :  { %3619 = vmatpush1.bf16.msra.mxu0 %v5622_v22  ;;  %v5680_v1 = vld [vmem:[#allocation2 + $0x484] ss:$24 sps:$4 sm:$0xff]   ;;  %v5683_v3 = vld [vmem:[#allocation2 + $0x480] ss:$24 sps:$4 sm:$0xff]   ;;  %v5690_v4 = vld [vmem:[#allocation2 + $0x754] ss:$24 sps:$4 sm:$0xff]  }
  0x4b   :  { %3660 = vmatpush1.bf16.msra.mxu1 %v5623_v23  ;;  %3620 = vmatprep.subr.bf16.mxu0 %v5624_v24  ;;  %v5693_v5 = vld [vmem:[#allocation2 + $0xa54] ss:$24 sps:$4 sm:$0xff]   ;;  %v5688_v8 = vld [vmem:[#allocation2 + $0x750] ss:$24 sps:$4 sm:$0xff]   ;;  %v5696_v10 = vld [vmem:[#allocation2 + $0x724] ss:$24 sps:$4 sm:$0xff]  }
  0x4c   :  { %3661 = vmatprep.subr.bf16.mxu1 %v5626_v25  ;;  %v5691_v9 = vld [vmem:[#allocation2 + $0xa50] ss:$24 sps:$4 sm:$0xff]   ;;  %v5699_v11 = vld [vmem:[#allocation2 + $0xa24] ss:$24 sps:$4 sm:$0xff]   ;;  %v5694_v12 = vld [vmem:[#allocation2 + $0x720] ss:$24 sps:$4 sm:$0xff]  }
  0x4d   :  { %v5697_v13 = vld [vmem:[#allocation2 + $0xa20] ss:$24 sps:$4 sm:$0xff]   ;;  %v5702_v14 = vld [vmem:[#allocation2 + $0x6f4] ss:$24 sps:$4 sm:$0xff]   ;;  %v5700_v16 = vld [vmem:[#allocation2 + $0x6f0] ss:$24 sps:$4 sm:$0xff]  }
  0x4e   :  { %3621 = vmatpush1.bf16.msra.mxu0 %v5628_v26  ;;  %v5705_v15 = vld [vmem:[#allocation2 + $0x9f4] ss:$24 sps:$4 sm:$0xff]   ;;  %v5703_v17 = vld [vmem:[#allocation2 + $0x9f0] ss:$24 sps:$4 sm:$0xff]   ;;  %v5708_v18 = vld [vmem:[#allocation2 + $0x6c4] ss:$24 sps:$4 sm:$0xff]  }
  0x4f   :  { %3662 = vmatpush1.bf16.msra.mxu1 %v5629_v27  ;;  %3622 = vmatprep.subr.bf16.mxu0 %v5630_v28  ;;  %v5711_v19 = vld [vmem:[#allocation2 + $0x9c4] ss:$24 sps:$4 sm:$0xff]   ;;  %v5706_v20 = vld [vmem:[#allocation2 + $0x6c0] ss:$24 sps:$4 sm:$0xff]   ;;  %v5714_v22 = vld [vmem:[#allocation2 + $0x694] ss:$24 sps:$4 sm:$0xff]  }
  0x50   :  { %3663 = vmatprep.subr.bf16.mxu1 %v5632_v29  ;;  %v5709_v21 = vld [vmem:[#allocation2 + $0x9c0] ss:$24 sps:$4 sm:$0xff]   ;;  %v5717_v23 = vld [vmem:[#allocation2 + $0x994] ss:$24 sps:$4 sm:$0xff]   ;;  %v5712_v24 = vld [vmem:[#allocation2 + $0x690] ss:$24 sps:$4 sm:$0xff]  }
  0x51   :  { %v5715_v25 = vld [vmem:[#allocation2 + $0x990] ss:$24 sps:$4 sm:$0xff]   ;;  %v5720_v26 = vld [vmem:[#allocation2 + $0x664] ss:$24 sps:$4 sm:$0xff]   ;;  %v5718_v28 = vld [vmem:[#allocation2 + $0x660] ss:$24 sps:$4 sm:$0xff]  }
  0x52   :  { %3623 = vmatpush1.bf16.msra.mxu0 %v5634_v30  ;;  %v5723_v27 = vld [vmem:[#allocation2 + $0x964] ss:$24 sps:$4 sm:$0xff]   ;;  %v5721_v29 = vld [vmem:[#allocation2 + $0x960] ss:$24 sps:$4 sm:$0xff]   ;;  %v5726_v30 = vld [vmem:[#allocation2 + $0x634] ss:$24 sps:$4 sm:$0xff]  }
  0x53   :  { %3664 = vmatpush1.bf16.msra.mxu1 %v5635_v31  ;;  %3624 = vmatprep.subr.bf16.mxu0 %v5636_v32  ;;  %v5729_v31 = vld [vmem:[#allocation2 + $0x934] ss:$24 sps:$4 sm:$0xff]   ;;  %v5744_v46 = vld [vmem:[#allocation2 + $0x8a4] ss:$24 sps:$4 sm:$0xff]  }
  0x54   :  { %3665 = vmatprep.subr.bf16.mxu1 %v5638_v33  ;;  %v6682_v32 = vld [vmem:[%s6813_s0 + $0x10] sm:$0xff]  ;;  %v6687_v33 = vld [vmem:[%s6813_s0 + $0x18] sm:$0xff] }
  0x55   :  { %v5747_v48 = vld [vmem:[#allocation2 + $0xba4] ss:$24 sps:$4 sm:$0xff]  }
  0x56   :  { %3625 = vmatpush2.bf16.msra.mxu0 %v5640_v34  ;;  %v5724_v34 = vld [vmem:[#allocation2 + $0x630] ss:$24 sps:$4 sm:$0xff]  }
  0x57   :  { %3666 = vmatpush2.bf16.msra.mxu1 %v5641_v35  ;;  %3626 = vmatprep.subr.bf16.mxu0 %v5642_v36  ;;  %v5727_v35 = vld [vmem:[#allocation2 + $0x930] ss:$24 sps:$4 sm:$0xff]   ;;  %v6691_v36 = vcombine.high %v6682_v32, %v6682_v32 }
  0x58   :  { %3667 = vmatprep.subr.bf16.mxu1 %v5644_v37  ;;  %v6695_v37 = vcombine.high %v6687_v33, %v6687_v33 }
  0x5a   :  { %3627 = vmatpush2.bf16.msra.mxu0 %v5646_v38  ;;  %v5732_v38 = vld [vmem:[#allocation2 + $0x604] ss:$24 sps:$4 sm:$0xff]  }
  0x5b   :  { %3668 = vmatpush2.bf16.msra.mxu1 %v5647_v39  ;;  %3628 = vmatprep.subr.bf16.mxu0 %v5648_v40  ;;  %v5735_v39 = vld [vmem:[#allocation2 + $0x904] ss:$24 sps:$4 sm:$0xff]   ;;  %v5730_v40 = vld [vmem:[#allocation2 + $0x600] ss:$24 sps:$4 sm:$0xff]  }
  0x5c   :  { %3669 = vmatprep.subr.bf16.mxu1 %v5650_v41  ;;  %v5733_v41 = vld [vmem:[#allocation2 + $0x900] ss:$24 sps:$4 sm:$0xff]  }
  0x5e   :  { %3629 = vmatpush2.bf16.msra.mxu0 %v5652_v42  ;;  %v5738_v42 = vld [vmem:[#allocation2 + $0x8d4] ss:$24 sps:$4 sm:$0xff]  }
  0x5f   :  { %3670 = vmatpush2.bf16.msra.mxu1 %v5653_v43  ;;  %3630 = vmatprep.subr.bf16.mxu0 %v5654_v44  ;;  %v5741_v43 = vld [vmem:[#allocation2 + $0xbd4] ss:$24 sps:$4 sm:$0xff]   ;;  %v5736_v44 = vld [vmem:[#allocation2 + $0x8d0] ss:$24 sps:$4 sm:$0xff]  }
  0x60   :  { %3671 = vmatprep.subr.bf16.mxu1 %v5656_v45  ;;  %v5739_v45 = vld [vmem:[#allocation2 + $0xbd0] ss:$24 sps:$4 sm:$0xff]  }
  0x62   :  { %3631 = vmatpush2.bf16.msra.mxu0 %v5658_v49  ;;  %v5742_v49 = vld [vmem:[#allocation2 + $0x8a0] ss:$24 sps:$4 sm:$0xff]  }
  0x63   :  { %3672 = vmatpush2.bf16.msra.mxu1 %v5659_v50  ;;  %3632 = vmatprep.subr.bf16.mxu0 %v5660_v52  ;;  %v5745_v50 = vld [vmem:[#allocation2 + $0xba0] ss:$24 sps:$4 sm:$0xff]   ;;  %v5750_v52 = vld [vmem:[#allocation2 + $0x874] ss:$24 sps:$4 sm:$0xff]  }
  0x64   :  { %3673 = vmatprep.subr.bf16.mxu1 %v5662_v53  ;;  %v5753_v53 = vld [vmem:[#allocation2 + $0xb74] ss:$24 sps:$4 sm:$0xff]  }
  0x66   :  { %3633 = vmatpush2.bf16.msra.mxu0 %v5664_v54  ;;  %v5748_v54 = vld [vmem:[#allocation2 + $0x870] ss:$24 sps:$4 sm:$0xff]  }
  0x67   :  { %3674 = vmatpush2.bf16.msra.mxu1 %v5665_v55  ;;  %3634 = vmatprep.subr.bf16.mxu0 %v5666_v56  ;;  %v5751_v55 = vld [vmem:[#allocation2 + $0xb70] ss:$24 sps:$4 sm:$0xff]   ;;  %v5756_v56 = vld [vmem:[#allocation2 + $0x844] ss:$24 sps:$4 sm:$0xff]  }
  0x68   :  { %3675 = vmatprep.subr.bf16.mxu1 %v5668_v57  ;;  %v5759_v57 = vld [vmem:[#allocation2 + $0xb44] ss:$24 sps:$4 sm:$0xff]  }
  0x6a   :  { %3635 = vmatpush2.bf16.msra.mxu0 %v5670_v58  ;;  %v5754_v58 = vld [vmem:[#allocation2 + $0x840] ss:$24 sps:$4 sm:$0xff]  }
  0x6b   :  { %3676 = vmatpush2.bf16.msra.mxu1 %v5671_v59  ;;  %3636 = vmatprep.subr.bf16.mxu0 %v5672_v60  ;;  %v5757_v59 = vld [vmem:[#allocation2 + $0xb40] ss:$24 sps:$4 sm:$0xff]   ;;  %v5762_v60 = vld [vmem:[#allocation2 + $0x814] ss:$24 sps:$4 sm:$0xff]  }
  0x6c   :  { %3677 = vmatprep.subr.bf16.mxu1 %v5674_v61  ;;  %v5765_v61 = vld [vmem:[#allocation2 + $0xb14] ss:$24 sps:$4 sm:$0xff]  }
  0x6e   :  { %3637 = vmatpush2.bf16.msra.mxu0 %v5676_v62  ;;  %v5760_v62 = vld [vmem:[#allocation2 + $0x810] ss:$24 sps:$4 sm:$0xff]  }
  0x6f   :  { %3678 = vmatpush2.bf16.msra.mxu1 %v5677_v63  ;;  %3638 = vmatprep.subr.bf16.mxu0 %v5678_v0  ;;  %v5763_v63 = vld [vmem:[#allocation2 + $0xb10] ss:$24 sps:$4 sm:$0xff]   ;;  %v5768_v0 = vld [vmem:[#allocation2 + $0x7e4] ss:$24 sps:$4 sm:$0xff]  }
  0x70   :  { %3679 = vmatprep.subr.bf16.mxu1 %v5680_v1  ;;  %v5771_v1 = vld [vmem:[#allocation2 + $0xae4] ss:$24 sps:$4 sm:$0xff]  }
  0x72   :  { %3639 = vmatpush2.bf16.msra.mxu0 %v5682_v2  ;;  %v5766_v2 = vld [vmem:[#allocation2 + $0x7e0] ss:$24 sps:$4 sm:$0xff]  }
  0x73   :  { %3680 = vmatpush2.bf16.msra.mxu1 %v5683_v3  ;;  %3690 = vmatprep.subr.bf16.mxu0 %v5690_v4  ;;  %v5769_v3 = vld [vmem:[#allocation2 + $0xae0] ss:$24 sps:$4 sm:$0xff]   ;;  %v5774_v4 = vld [vmem:[#allocation2 + $0x7b4] ss:$24 sps:$4 sm:$0xff]  }
  0x74   :  { %3731 = vmatprep.subr.bf16.mxu1 %v5693_v5  ;;  %v5777_v5 = vld [vmem:[#allocation2 + $0xab4] ss:$24 sps:$4 sm:$0xff]  }
  0x75   :  { %3641 = vmatmul.mubr.bf16.vlgmr.msra.gmra.mxu0 %v6673_v6 }
  0x76   :  { %3682 = vmatmul.mubr.bf16.vlgmr.msra.gmra.mxu1 %v6675_v7  ;;  %3691 = vmatpush1.bf16.msra.mxu0 %v5688_v8  ;;  %v5772_v8 = vld [vmem:[#allocation2 + $0x7b0] ss:$24 sps:$4 sm:$0xff]  }
  0x77   :  { %3732 = vmatpush1.bf16.msra.mxu1 %v5691_v9  ;;  %3692 = vmatprep.subr.bf16.mxu0 %v5696_v10  ;;  %v5775_v9 = vld [vmem:[#allocation2 + $0xab0] ss:$24 sps:$4 sm:$0xff]   ;;  %v5780_v10 = vld [vmem:[#allocation2 + $0x784] ss:$24 sps:$4 sm:$0xff]  }
  0x78   :  { %3733 = vmatprep.subr.bf16.mxu1 %v5699_v11  ;;  %3722 = vmatprep.mubr.bf16.mxu0 %v6691_v36  ;;  %v5783_v11 = vld [vmem:[#allocation2 + $0xa84] ss:$24 sps:$4 sm:$0xff]  }
  0x79   :  { %3763 = vmatprep.mubr.bf16.mxu1 %v6695_v37 }
  0x7a   :  { %3693 = vmatpush1.bf16.msra.mxu0 %v5694_v12  ;;  %v5778_v12 = vld [vmem:[#allocation2 + $0x780] ss:$24 sps:$4 sm:$0xff]  }
  0x7b   :  { %3734 = vmatpush1.bf16.msra.mxu1 %v5697_v13  ;;  %3694 = vmatprep.subr.bf16.mxu0 %v5702_v14  ;;  %v5781_v13 = vld [vmem:[#allocation2 + $0xa80] ss:$24 sps:$4 sm:$0xff]   ;;  %v5790_v14 = vld [vmem:[#allocation2 + $0xd54] ss:$24 sps:$4 sm:$0xff]  }
  0x7c   :  { %3735 = vmatprep.subr.bf16.mxu1 %v5705_v15  ;;  %v5793_v15 = vld [vmem:[#allocation2 + $0x1054] ss:$24 sps:$4 sm:$0xff]  }
  0x7e   :  { %3695 = vmatpush1.bf16.msra.mxu0 %v5700_v16  ;;  %v6701_v16 = vcombine.low %v6682_v32, %v6682_v32  ;;  %v5808_v32 = vld [vmem:[#allocation2 + $0xcc4] ss:$24 sps:$4 sm:$0xff]  }
  0x7f   :  { %3736 = vmatpush1.bf16.msra.mxu1 %v5703_v17  ;;  %3696 = vmatprep.subr.bf16.mxu0 %v5708_v18  ;;  %v6705_v17 = vcombine.low %v6687_v33, %v6687_v33  ;;  %v5788_v18 = vld [vmem:[#allocation2 + $0xd50] ss:$24 sps:$4 sm:$0xff]   ;;  %v5811_v33 = vld [vmem:[#allocation2 + $0xfc4] ss:$24 sps:$4 sm:$0xff]  }
  0x80   :  { %3737 = vmatprep.subr.bf16.mxu1 %v5711_v19  ;;  %v5791_v19 = vld [vmem:[#allocation2 + $0x1050] ss:$24 sps:$4 sm:$0xff]  }
  0x82   :  { %3697 = vmatpush1.bf16.msra.mxu0 %v5706_v20  ;;  %v5796_v20 = vld [vmem:[#allocation2 + $0xd24] ss:$24 sps:$4 sm:$0xff]  }
  0x83   :  { %3738 = vmatpush1.bf16.msra.mxu1 %v5709_v21  ;;  %3698 = vmatprep.subr.bf16.mxu0 %v5714_v22  ;;  %v5799_v21 = vld [vmem:[#allocation2 + $0x1024] ss:$24 sps:$4 sm:$0xff]  }
  0x84   :  { %3739 = vmatprep.subr.bf16.mxu1 %v5717_v23  ;;  %v6710_v22 = vld [vmem:[%s6813_s0 + $0x20] sm:$0xff]  ;;  %v6715_v23 = vld [vmem:[%s6813_s0 + $0x28] sm:$0xff] }
  0x86   :  { %3699 = vmatpush1.bf16.msra.mxu0 %v5712_v24  ;;  %v6719_v24 = vcombine.high %v6710_v22, %v6710_v22 }
  0x87   :  { %3740 = vmatpush1.bf16.msra.mxu1 %v5715_v25  ;;  %3700 = vmatprep.subr.bf16.mxu0 %v5720_v26  ;;  %v6723_v25 = vcombine.high %v6715_v23, %v6715_v23  ;;  %v5794_v26 = vld [vmem:[#allocation2 + $0xd20] ss:$24 sps:$4 sm:$0xff]  }
  0x88   :  { %3741 = vmatprep.subr.bf16.mxu1 %v5723_v27  ;;  %v5797_v27 = vld [vmem:[#allocation2 + $0x1020] ss:$24 sps:$4 sm:$0xff]  }
  0x8a   :  { %3701 = vmatpush1.bf16.msra.mxu0 %v5718_v28  ;;  %v5802_v28 = vld [vmem:[#allocation2 + $0xcf4] ss:$24 sps:$4 sm:$0xff]  }
  0x8b   :  { %3742 = vmatpush1.bf16.msra.mxu1 %v5721_v29  ;;  %3702 = vmatprep.subr.bf16.mxu0 %v5726_v30  ;;  %v5805_v29 = vld [vmem:[#allocation2 + $0xff4] ss:$24 sps:$4 sm:$0xff]   ;;  %v5800_v30 = vld [vmem:[#allocation2 + $0xcf0] ss:$24 sps:$4 sm:$0xff]  }
  0x8c   :  { %3743 = vmatprep.subr.bf16.mxu1 %v5729_v31  ;;  %v5803_v31 = vld [vmem:[#allocation2 + $0xff0] ss:$24 sps:$4 sm:$0xff]  }
  0x8e   :  { %3703 = vmatpush1.bf16.msra.mxu0 %v5724_v34  ;;  %v5806_v34 = vld [vmem:[#allocation2 + $0xcc0] ss:$24 sps:$4 sm:$0xff]  }
  0x8f   :  { %3744 = vmatpush1.bf16.msra.mxu1 %v5727_v35  ;;  %3704 = vmatprep.subr.bf16.mxu0 %v5732_v38  ;;  %v5809_v35 = vld [vmem:[#allocation2 + $0xfc0] ss:$24 sps:$4 sm:$0xff]   ;;  %v5814_v38 = vld [vmem:[#allocation2 + $0xc94] ss:$24 sps:$4 sm:$0xff]  }
  0x90   :  { %3745 = vmatprep.subr.bf16.mxu1 %v5735_v39  ;;  %v5817_v39 = vld [vmem:[#allocation2 + $0xf94] ss:$24 sps:$4 sm:$0xff]  }
  0x92   :  { %3705 = vmatpush1.bf16.msra.mxu0 %v5730_v40  ;;  %v5812_v40 = vld [vmem:[#allocation2 + $0xc90] ss:$24 sps:$4 sm:$0xff]  }
  0x93   :  { %3746 = vmatpush1.bf16.msra.mxu1 %v5733_v41  ;;  %3706 = vmatprep.subr.bf16.mxu0 %v5738_v42  ;;  %v5815_v41 = vld [vmem:[#allocation2 + $0xf90] ss:$24 sps:$4 sm:$0xff]   ;;  %v5820_v42 = vld [vmem:[#allocation2 + $0xc64] ss:$24 sps:$4 sm:$0xff]  }
  0x94   :  { %3747 = vmatprep.subr.bf16.mxu1 %v5741_v43  ;;  %v5823_v43 = vld [vmem:[#allocation2 + $0xf64] ss:$24 sps:$4 sm:$0xff]  }
  0x96   :  { %3707 = vmatpush2.bf16.msra.mxu0 %v5736_v44  ;;  %v5818_v44 = vld [vmem:[#allocation2 + $0xc60] ss:$24 sps:$4 sm:$0xff]  }
  0x97   :  { %3748 = vmatpush2.bf16.msra.mxu1 %v5739_v45  ;;  %3708 = vmatprep.subr.bf16.mxu0 %v5744_v46  ;;  %v5821_v45 = vld [vmem:[#allocation2 + $0xf60] ss:$24 sps:$4 sm:$0xff]   ;;  %v5826_v46 = vld [vmem:[#allocation2 + $0xc34] ss:$24 sps:$4 sm:$0xff]  }
  0x98   :  { %3749 = vmatprep.subr.bf16.mxu1 %v5747_v48  ;;  %v5829_v48 = vld [vmem:[#allocation2 + $0xf34] ss:$24 sps:$4 sm:$0xff]  }
  0x9a   :  { %3709 = vmatpush2.bf16.msra.mxu0 %v5742_v49  ;;  %v5824_v49 = vld [vmem:[#allocation2 + $0xc30] ss:$24 sps:$4 sm:$0xff]  }
  0x9b   :  { %3750 = vmatpush2.bf16.msra.mxu1 %v5745_v50  ;;  %3710 = vmatprep.subr.bf16.mxu0 %v5750_v52  ;;  %v5827_v50 = vld [vmem:[#allocation2 + $0xf30] ss:$24 sps:$4 sm:$0xff]   ;;  %v5832_v52 = vld [vmem:[#allocation2 + $0xc04] ss:$24 sps:$4 sm:$0xff]  }
  0x9c   :  { %3751 = vmatprep.subr.bf16.mxu1 %v5753_v53  ;;  %v5835_v53 = vld [vmem:[#allocation2 + $0xf04] ss:$24 sps:$4 sm:$0xff]  }
  0x9e   :  { %3711 = vmatpush2.bf16.msra.mxu0 %v5748_v54  ;;  %v5830_v54 = vld [vmem:[#allocation2 + $0xc00] ss:$24 sps:$4 sm:$0xff]  }
  0x9f   :  { %3752 = vmatpush2.bf16.msra.mxu1 %v5751_v55  ;;  %3712 = vmatprep.subr.bf16.mxu0 %v5756_v56  ;;  %v5833_v55 = vld [vmem:[#allocation2 + $0xf00] ss:$24 sps:$4 sm:$0xff]   ;;  %v5838_v56 = vld [vmem:[#allocation2 + $0xed4] ss:$24 sps:$4 sm:$0xff]  }
  0xa0   :  { %3753 = vmatprep.subr.bf16.mxu1 %v5759_v57  ;;  %v5841_v57 = vld [vmem:[#allocation2 + $0x11d4] ss:$24 sps:$4 sm:$0xff]  }
  0xa2   :  { %3713 = vmatpush2.bf16.msra.mxu0 %v5754_v58  ;;  %v5836_v58 = vld [vmem:[#allocation2 + $0xed0] ss:$24 sps:$4 sm:$0xff]  }
  0xa3   :  { %3754 = vmatpush2.bf16.msra.mxu1 %v5757_v59  ;;  %3714 = vmatprep.subr.bf16.mxu0 %v5762_v60  ;;  %v5839_v59 = vld [vmem:[#allocation2 + $0x11d0] ss:$24 sps:$4 sm:$0xff]   ;;  %v5844_v60 = vld [vmem:[#allocation2 + $0xea4] ss:$24 sps:$4 sm:$0xff]  }
  0xa4   :  { %3755 = vmatprep.subr.bf16.mxu1 %v5765_v61  ;;  %v5847_v61 = vld [vmem:[#allocation2 + $0x11a4] ss:$24 sps:$4 sm:$0xff]  }
  0xa6   :  { %3715 = vmatpush2.bf16.msra.mxu0 %v5760_v62  ;;  %v5842_v62 = vld [vmem:[#allocation2 + $0xea0] ss:$24 sps:$4 sm:$0xff]  }
  0xa7   :  { %3756 = vmatpush2.bf16.msra.mxu1 %v5763_v63  ;;  %3716 = vmatprep.subr.bf16.mxu0 %v5768_v0  ;;  %v5845_v63 = vld [vmem:[#allocation2 + $0x11a0] ss:$24 sps:$4 sm:$0xff]   ;;  %v5850_v0 = vld [vmem:[#allocation2 + $0xe74] ss:$24 sps:$4 sm:$0xff]  }
  0xa8   :  { %3757 = vmatprep.subr.bf16.mxu1 %v5771_v1  ;;  %v5853_v1 = vld [vmem:[#allocation2 + $0x1174] ss:$24 sps:$4 sm:$0xff]  }
  0xaa   :  { %3717 = vmatpush2.bf16.msra.mxu0 %v5766_v2  ;;  %v5848_v2 = vld [vmem:[#allocation2 + $0xe70] ss:$24 sps:$4 sm:$0xff]  }
  0xab   :  { %3758 = vmatpush2.bf16.msra.mxu1 %v5769_v3  ;;  %3718 = vmatprep.subr.bf16.mxu0 %v5774_v4  ;;  %v5851_v3 = vld [vmem:[#allocation2 + $0x1170] ss:$24 sps:$4 sm:$0xff]   ;;  %v5856_v4 = vld [vmem:[#allocation2 + $0xe44] ss:$24 sps:$4 sm:$0xff]  }
  0xac   :  { %3759 = vmatprep.subr.bf16.mxu1 %v5777_v5  ;;  %v5859_v5 = vld [vmem:[#allocation2 + $0x1144] ss:$24 sps:$4 sm:$0xff]  }
  0xae   :  { %3719 = vmatpush2.bf16.msra.mxu0 %v5772_v8  ;;  %v5854_v8 = vld [vmem:[#allocation2 + $0xe40] ss:$24 sps:$4 sm:$0xff]  }
  0xaf   :  { %3760 = vmatpush2.bf16.msra.mxu1 %v5775_v9  ;;  %3720 = vmatprep.subr.bf16.mxu0 %v5780_v10  ;;  %v5857_v9 = vld [vmem:[#allocation2 + $0x1140] ss:$24 sps:$4 sm:$0xff]   ;;  %v5862_v10 = vld [vmem:[#allocation2 + $0xe14] ss:$24 sps:$4 sm:$0xff]  }
  0xb0   :  { %3761 = vmatprep.subr.bf16.mxu1 %v5783_v11  ;;  %v5865_v11 = vld [vmem:[#allocation2 + $0x1114] ss:$24 sps:$4 sm:$0xff]  }
  0xb2   :  { %3721 = vmatpush2.bf16.msra.mxu0 %v5778_v12  ;;  %v5860_v12 = vld [vmem:[#allocation2 + $0xe10] ss:$24 sps:$4 sm:$0xff]  }
  0xb3   :  { %3762 = vmatpush2.bf16.msra.mxu1 %v5781_v13  ;;  %3772 = vmatprep.subr.bf16.mxu0 %v5790_v14  ;;  %v5863_v13 = vld [vmem:[#allocation2 + $0x1110] ss:$24 sps:$4 sm:$0xff]   ;;  %v5868_v14 = vld [vmem:[#allocation2 + $0xde4] ss:$24 sps:$4 sm:$0xff]  }
  0xb4   :  { %3813 = vmatprep.subr.bf16.mxu1 %v5793_v15  ;;  %v5871_v15 = vld [vmem:[#allocation2 + $0x10e4] ss:$24 sps:$4 sm:$0xff]  }
  0xb5   :  { %3723 = vmatmul.mubr.bf16.vlgmr.msra.gmra.mxu0 %v6701_v16 }
  0xb6   :  { %3764 = vmatmul.mubr.bf16.vlgmr.msra.gmra.mxu1 %v6705_v17  ;;  %3773 = vmatpush1.bf16.msra.mxu0 %v5788_v18  ;;  %v5866_v18 = vld [vmem:[#allocation2 + $0xde0] ss:$24 sps:$4 sm:$0xff]  }
  0xb7   :  { %3814 = vmatpush1.bf16.msra.mxu1 %v5791_v19  ;;  %3774 = vmatprep.subr.bf16.mxu0 %v5796_v20  ;;  %v5869_v19 = vld [vmem:[#allocation2 + $0x10e0] ss:$24 sps:$4 sm:$0xff]   ;;  %v5874_v20 = vld [vmem:[#allocation2 + $0xdb4] ss:$24 sps:$4 sm:$0xff]  }
  0xb8   :  { %3815 = vmatprep.subr.bf16.mxu1 %v5799_v21  ;;  %3804 = vmatprep.mubr.bf16.mxu0 %v6719_v24  ;;  %v5877_v21 = vld [vmem:[#allocation2 + $0x10b4] ss:$24 sps:$4 sm:$0xff]  }
  0xb9   :  { %3845 = vmatprep.mubr.bf16.mxu1 %v6723_v25 }
  0xba   :  { %3775 = vmatpush1.bf16.msra.mxu0 %v5794_v26  ;;  %v5872_v26 = vld [vmem:[#allocation2 + $0xdb0] ss:$24 sps:$4 sm:$0xff]  }
  0xbb   :  { %3816 = vmatpush1.bf16.msra.mxu1 %v5797_v27  ;;  %3776 = vmatprep.subr.bf16.mxu0 %v5802_v28  ;;  %v5875_v27 = vld [vmem:[#allocation2 + $0x10b0] ss:$24 sps:$4 sm:$0xff]   ;;  %v5880_v28 = vld [vmem:[#allocation2 + $0xd84] ss:$24 sps:$4 sm:$0xff]  }
  0xbc   :  { %3817 = vmatprep.subr.bf16.mxu1 %v5805_v29  ;;  %v5883_v29 = vld [vmem:[#allocation2 + $0x1084] ss:$24 sps:$4 sm:$0xff]  }
  0xbe   :  { %3777 = vmatpush1.bf16.msra.mxu0 %v5800_v30  ;;  %v5878_v30 = vld [vmem:[#allocation2 + $0xd80] ss:$24 sps:$4 sm:$0xff]  }
  0xbf   :  { %3818 = vmatpush1.bf16.msra.mxu1 %v5803_v31  ;;  %3778 = vmatprep.subr.bf16.mxu0 %v5808_v32  ;;  %v5881_v31 = vld [vmem:[#allocation2 + $0x1080] ss:$24 sps:$4 sm:$0xff]   ;;  %v5890_v32 = vld [vmem:[#allocation2 + $0x15c] ss:$24 sps:$4 sm:$0xff]  }
  0xc0   :  { %3819 = vmatprep.subr.bf16.mxu1 %v5811_v33  ;;  %v5893_v33 = vld [vmem:[#allocation2 + $0x45c] ss:$24 sps:$4 sm:$0xff]  }
  0xc2   :  { %3779 = vmatpush1.bf16.msra.mxu0 %v5806_v34  ;;  %v6731_v34 = vcombine.low %v6710_v22, %v6710_v22  ;;  %v5897_v22 = vld [vmem:[#allocation2 + $0x428] ss:$24 sps:$4 sm:$0xff]  }
  0xc3   :  { %3820 = vmatpush1.bf16.msra.mxu1 %v5809_v35  ;;  %3780 = vmatprep.subr.bf16.mxu0 %v5814_v38  ;;  %v6735_v35 = vcombine.low %v6715_v23, %v6715_v23  ;;  %v5888_v38 = vld [vmem:[#allocation2 + $0x158] ss:$24 sps:$4 sm:$0xff]   ;;  %v5905_v23 = vld [vmem:[#allocation2 + $0x3fc] ss:$24 sps:$4 sm:$0xff]  }
  0xc4   :  { %3821 = vmatprep.subr.bf16.mxu1 %v5817_v39  ;;  %v5891_v39 = vld [vmem:[#allocation2 + $0x458] ss:$24 sps:$4 sm:$0xff]  }
  0xc6   :  { %3781 = vmatpush1.bf16.msra.mxu0 %v5812_v40  ;;  %v5896_v40 = vld [vmem:[#allocation2 + $0x12c] ss:$24 sps:$4 sm:$0xff]  }
  0xc7   :  { %3822 = vmatpush1.bf16.msra.mxu1 %v5815_v41  ;;  %3782 = vmatprep.subr.bf16.mxu0 %v5820_v42  ;;  %v5899_v41 = vld [vmem:[#allocation2 + $0x42c] ss:$24 sps:$4 sm:$0xff]   ;;  %v5894_v42 = vld [vmem:[#allocation2 + $0x128] ss:$24 sps:$4 sm:$0xff]  }
  0xc8   :  { %3823 = vmatprep.subr.bf16.mxu1 %v5823_v43  ;;  %v5902_v43 = vld [vmem:[#allocation2 + $0xfc] ss:$24 sps:$4 sm:$0xff]  }
  0xca   :  { %3783 = vmatpush1.bf16.msra.mxu0 %v5818_v44  ;;  %v5900_v44 = vld [vmem:[#allocation2 + $0xf8] ss:$24 sps:$4 sm:$0xff]  }
  0xcb   :  { %3824 = vmatpush1.bf16.msra.mxu1 %v5821_v45  ;;  %3784 = vmatprep.subr.bf16.mxu0 %v5826_v46  ;;  %v5903_v45 = vld [vmem:[#allocation2 + $0x3f8] ss:$24 sps:$4 sm:$0xff]   ;;  %v5908_v46 = vld [vmem:[#allocation2 + $0xcc] ss:$24 sps:$4 sm:$0xff]  }
  0xcc   :  { %3825 = vmatprep.subr.bf16.mxu1 %v5829_v48  ;;  %v5911_v48 = vld [vmem:[#allocation2 + $0x3cc] ss:$24 sps:$4 sm:$0xff]  }
  0xce   :  { %3785 = vmatpush1.bf16.msra.mxu0 %v5824_v49  ;;  %v5906_v49 = vld [vmem:[#allocation2 + $0xc8] ss:$24 sps:$4 sm:$0xff]  }
  0xcf   :  { %3826 = vmatpush1.bf16.msra.mxu1 %v5827_v50  ;;  %3786 = vmatprep.subr.bf16.mxu0 %v5832_v52  ;;  %v5909_v50 = vld [vmem:[#allocation2 + $0x3c8] ss:$24 sps:$4 sm:$0xff]   ;;  %v5914_v52 = vld [vmem:[#allocation2 + $0x9c] ss:$24 sps:$4 sm:$0xff]  }
  0xd0   :  { %3827 = vmatprep.subr.bf16.mxu1 %v5835_v53  ;;  %v5917_v53 = vld [vmem:[#allocation2 + $0x39c] ss:$24 sps:$4 sm:$0xff]  }
  0xd2   :  { %3787 = vmatpush1.bf16.msra.mxu0 %v5830_v54  ;;  %v5912_v54 = vld [vmem:[#allocation2 + $0x98] ss:$24 sps:$4 sm:$0xff]  }
  0xd3   :  { %3828 = vmatpush1.bf16.msra.mxu1 %v5833_v55  ;;  %3788 = vmatprep.subr.bf16.mxu0 %v5838_v56  ;;  %v5915_v55 = vld [vmem:[#allocation2 + $0x398] ss:$24 sps:$4 sm:$0xff]   ;;  %v5920_v56 = vld [vmem:[#allocation2 + $0x6c] ss:$24 sps:$4 sm:$0xff]  }
  0xd4   :  { %3829 = vmatprep.subr.bf16.mxu1 %v5841_v57  ;;  %v5923_v57 = vld [vmem:[#allocation2 + $0x36c] ss:$24 sps:$4 sm:$0xff]  }
  0xd6   :  { %3789 = vmatpush2.bf16.msra.mxu0 %v5836_v58  ;;  %v5918_v58 = vld [vmem:[#allocation2 + $0x68] ss:$24 sps:$4 sm:$0xff]  }
  0xd7   :  { %3830 = vmatpush2.bf16.msra.mxu1 %v5839_v59  ;;  %3790 = vmatprep.subr.bf16.mxu0 %v5844_v60  ;;  %v5921_v59 = vld [vmem:[#allocation2 + $0x368] ss:$24 sps:$4 sm:$0xff]   ;;  %v5926_v60 = vld [vmem:[#allocation2 + $0x3c] ss:$24 sps:$4 sm:$0xff]  }
  0xd8   :  { %3831 = vmatprep.subr.bf16.mxu1 %v5847_v61  ;;  %v5929_v61 = vld [vmem:[#allocation2 + $0x33c] ss:$24 sps:$4 sm:$0xff]  }
  0xda   :  { %3791 = vmatpush2.bf16.msra.mxu0 %v5842_v62  ;;  %v5924_v62 = vld [vmem:[#allocation2 + $0x38] ss:$24 sps:$4 sm:$0xff]  }
  0xdb   :  { %3832 = vmatpush2.bf16.msra.mxu1 %v5845_v63  ;;  %3792 = vmatprep.subr.bf16.mxu0 %v5850_v0  ;;  %v5927_v63 = vld [vmem:[#allocation2 + $0x338] ss:$24 sps:$4 sm:$0xff]   ;;  %v5932_v0 = vld [vmem:[#allocation2 + $0xc] ss:$24 sps:$4 sm:$0xff]  }
  0xdc   :  { %3833 = vmatprep.subr.bf16.mxu1 %v5853_v1  ;;  %v5935_v1 = vld [vmem:[#allocation2 + $0x30c] ss:$24 sps:$4 sm:$0xff]  }
  0xde   :  { %3793 = vmatpush2.bf16.msra.mxu0 %v5848_v2  ;;  %v5930_v2 = vld [vmem:[#allocation2 + $0x8] ss:$24 sps:$4 sm:$0xff]  }
  0xdf   :  { %3834 = vmatpush2.bf16.msra.mxu1 %v5851_v3  ;;  %3794 = vmatprep.subr.bf16.mxu0 %v5856_v4  ;;  %v5933_v3 = vld [vmem:[#allocation2 + $0x308] ss:$24 sps:$4 sm:$0xff]   ;;  %v5938_v4 = vld [vmem:[#allocation2 + $0x2dc] ss:$24 sps:$4 sm:$0xff]  }
  0xe0   :  { %3835 = vmatprep.subr.bf16.mxu1 %v5859_v5  ;;  %v5941_v5 = vld [vmem:[#allocation2 + $0x5dc] ss:$24 sps:$4 sm:$0xff]  }
  0xe2   :  { %3795 = vmatpush2.bf16.msra.mxu0 %v5854_v8  ;;  %v5936_v8 = vld [vmem:[#allocation2 + $0x2d8] ss:$24 sps:$4 sm:$0xff]  }
  0xe3   :  { %3836 = vmatpush2.bf16.msra.mxu1 %v5857_v9  ;;  %3796 = vmatprep.subr.bf16.mxu0 %v5862_v10  ;;  %v5939_v9 = vld [vmem:[#allocation2 + $0x5d8] ss:$24 sps:$4 sm:$0xff]   ;;  %v5944_v10 = vld [vmem:[#allocation2 + $0x2ac] ss:$24 sps:$4 sm:$0xff]  }
  0xe4   :  { %3837 = vmatprep.subr.bf16.mxu1 %v5865_v11  ;;  %v5947_v11 = vld [vmem:[#allocation2 + $0x5ac] ss:$24 sps:$4 sm:$0xff]  }
  0xe6   :  { %3797 = vmatpush2.bf16.msra.mxu0 %v5860_v12  ;;  %v5942_v12 = vld [vmem:[#allocation2 + $0x2a8] ss:$24 sps:$4 sm:$0xff]  }
  0xe7   :  { %3838 = vmatpush2.bf16.msra.mxu1 %v5863_v13  ;;  %3798 = vmatprep.subr.bf16.mxu0 %v5868_v14  ;;  %v5945_v13 = vld [vmem:[#allocation2 + $0x5a8] ss:$24 sps:$4 sm:$0xff]   ;;  %v5950_v14 = vld [vmem:[#allocation2 + $0x27c] ss:$24 sps:$4 sm:$0xff]  }
  0xe8   :  { %3839 = vmatprep.subr.bf16.mxu1 %v5871_v15  ;;  %v5953_v15 = vld [vmem:[#allocation2 + $0x57c] ss:$24 sps:$4 sm:$0xff]  }
  0xea   :  { %3799 = vmatpush2.bf16.msra.mxu0 %v5866_v18  ;;  %v5948_v18 = vld [vmem:[#allocation2 + $0x278] ss:$24 sps:$4 sm:$0xff]  }
  0xeb   :  { %3840 = vmatpush2.bf16.msra.mxu1 %v5869_v19  ;;  %3800 = vmatprep.subr.bf16.mxu0 %v5874_v20  ;;  %v5951_v19 = vld [vmem:[#allocation2 + $0x578] ss:$24 sps:$4 sm:$0xff]   ;;  %v5956_v20 = vld [vmem:[#allocation2 + $0x24c] ss:$24 sps:$4 sm:$0xff]  }
  0xec   :  { %3841 = vmatprep.subr.bf16.mxu1 %v5877_v21  ;;  %v5959_v21 = vld [vmem:[#allocation2 + $0x54c] ss:$24 sps:$4 sm:$0xff]  }
  0xee   :  { %3801 = vmatpush2.bf16.msra.mxu0 %v5872_v26  ;;  %v5954_v26 = vld [vmem:[#allocation2 + $0x248] ss:$24 sps:$4 sm:$0xff]  }
  0xef   :  { %3842 = vmatpush2.bf16.msra.mxu1 %v5875_v27  ;;  %3802 = vmatprep.subr.bf16.mxu0 %v5880_v28  ;;  %v5957_v27 = vld [vmem:[#allocation2 + $0x548] ss:$24 sps:$4 sm:$0xff]   ;;  %v5962_v28 = vld [vmem:[#allocation2 + $0x21c] ss:$24 sps:$4 sm:$0xff]  }
  0xf0   :  { %3843 = vmatprep.subr.bf16.mxu1 %v5883_v29  ;;  %v5965_v29 = vld [vmem:[#allocation2 + $0x51c] ss:$24 sps:$4 sm:$0xff]  }
  0xf2   :  { %3803 = vmatpush2.bf16.msra.mxu0 %v5878_v30  ;;  %v5960_v30 = vld [vmem:[#allocation2 + $0x218] ss:$24 sps:$4 sm:$0xff]  }
  0xf3   :  { %3844 = vmatpush2.bf16.msra.mxu1 %v5881_v31  ;;  %3854 = vmatprep.subr.bf16.mxu0 %v5890_v32  ;;  %v5963_v31 = vld [vmem:[#allocation2 + $0x518] ss:$24 sps:$4 sm:$0xff]   ;;  %v5968_v32 = vld [vmem:[#allocation2 + $0x1ec] ss:$24 sps:$4 sm:$0xff]  }
  0xf4   :  { %3895 = vmatprep.subr.bf16.mxu1 %v5893_v33  ;;  %v5971_v33 = vld [vmem:[#allocation2 + $0x4ec] ss:$24 sps:$4 sm:$0xff]  }
  0xf5   :  { %3805 = vmatmul.mubr.bf16.vlgmr.msra.gmra.mxu0 %v6731_v34 }
  0xf6   :  { %3846 = vmatmul.mubr.bf16.vlgmr.msra.gmra.mxu1 %v6735_v35  ;;  %3855 = vmatpush1.bf16.msra.mxu0 %v5888_v38  ;;  %v5966_v38 = vld [vmem:[#allocation2 + $0x1e8] ss:$24 sps:$4 sm:$0xff]  }
  0xf7   :  { %3896 = vmatpush1.bf16.msra.mxu1 %v5891_v39  ;;  %3856 = vmatprep.subr.bf16.mxu0 %v5896_v40  ;;  %v5969_v39 = vld [vmem:[#allocation2 + $0x4e8] ss:$24 sps:$4 sm:$0xff]   ;;  %v5974_v40 = vld [vmem:[#allocation2 + $0x1bc] ss:$24 sps:$4 sm:$0xff]  }
  0xf8   :  { %3897 = vmatprep.subr.bf16.mxu1 %v5899_v41  ;;  %3886 = vmatprep.mubr.bf16.mxu0 %v6664_v47  ;;  %v656_v41 = vlaneseq }
  0xf9   :  { %3927 = vmatprep.mubr.bf16.mxu1 %v6669_v51 }
  0xfa   :  { %3857 = vmatpush1.bf16.msra.mxu0 %v5894_v42  ;;  %v5977_v42 = vld [vmem:[#allocation2 + $0x4bc] ss:$24 sps:$4 sm:$0xff]  }
  0xfb   :  { %3898 = vmatpush1.bf16.msra.mxu1 %v5897_v22  ;;  %3858 = vmatprep.subr.bf16.mxu0 %v5902_v43  ;;  %v5972_v22 = vld [vmem:[#allocation2 + $0x1b8] ss:$24 sps:$4 sm:$0xff]  }
  0xfc   :  { %3899 = vmatprep.subr.bf16.mxu1 %v5905_v23  ;;  %v5975_v43 = vld [vmem:[#allocation2 + $0x4b8] ss:$24 sps:$4 sm:$0xff]   ;;  %v5980_v23 = vld [vmem:[#allocation2 + $0x18c] ss:$24 sps:$4 sm:$0xff]  }
  0xfe   :  { %3859 = vmatpush1.bf16.msra.mxu0 %v5900_v44  ;;  %v6741_v44 = vshrl.u32 %v656_v41, 7  ;;  %v6020_v41 = vld [vmem:[#allocation2 + $0x638] ss:$24 sps:$4 sm:$0xff]  }
  0xff   :  { %3900 = vmatpush1.bf16.msra.mxu1 %v5903_v45  ;;  %3860 = vmatprep.subr.bf16.mxu0 %v5908_v46  ;;  %v5983_v45 = vld [vmem:[#allocation2 + $0x48c] ss:$24 sps:$4 sm:$0xff]   ;;  %v5978_v46 = vld [vmem:[#allocation2 + $0x188] ss:$24 sps:$4 sm:$0xff]  }
 0x100   :  { %3901 = vmatprep.subr.bf16.mxu1 %v5911_v48  ;;  %v5981_v48 = vld [vmem:[#allocation2 + $0x488] ss:$24 sps:$4 sm:$0xff]  }
 0x102   :  { %3861 = vmatpush1.bf16.msra.mxu0 %v5906_v49  ;;  %v654_v49 = vld [vmem:[#allocation4] sm:$0x3f] }
 0x103   :  { %3902 = vmatpush1.bf16.msra.mxu1 %v5909_v50  ;;  %3862 = vmatprep.subr.bf16.mxu0 %v5914_v52  ;;  %v658_v50 = vsub.s32 0, %v6741_v44  ;;  %v5986_v52 = vld [vmem:[#allocation2 + $0x75c] ss:$24 sps:$4 sm:$0xff]  }
 0x104   :  { %3903 = vmatprep.subr.bf16.mxu1 %v5917_v53  ;;  %v5989_v53 = vld [vmem:[#allocation2 + $0xa5c] ss:$24 sps:$4 sm:$0xff]  }
 0x106   :  { %3863 = vmatpush1.bf16.msra.mxu0 %v5912_v54  ;;  %v662_v54 = vsub.s32 1, %v6741_v44 }
 0x107   :  { %3904 = vmatpush1.bf16.msra.mxu1 %v5915_v55  ;;  %3864 = vmatprep.subr.bf16.mxu0 %v5920_v56  ;;  %v5984_v55 = vld [vmem:[#allocation2 + $0x758] ss:$24 sps:$4 sm:$0xff]   ;;  %v659_v56 = vrot.slane %v654_v49, %v658_v50 }
 0x108   :  { %3905 = vmatprep.subr.bf16.mxu1 %v5923_v57  ;;  %v5987_v57 = vld [vmem:[#allocation2 + $0xa58] ss:$24 sps:$4 sm:$0xff]  }
 0x109   :  { %v6035_v50 = vld [vmem:[#allocation2 + $0xbd8] ss:$24 sps:$4 sm:$0xff]  }
 0x10a   :  { %3865 = vmatpush1.bf16.msra.mxu0 %v5918_v58  ;;  %v5992_v58 = vld [vmem:[#allocation2 + $0x72c] ss:$24 sps:$4 sm:$0xff]  }
 0x10b   :  { %3906 = vmatpush1.bf16.msra.mxu1 %v5921_v59  ;;  %3866 = vmatprep.subr.bf16.mxu0 %v5926_v60  ;;  %v5995_v59 = vld [vmem:[#allocation2 + $0xa2c] ss:$24 sps:$4 sm:$0xff]   ;;  %v663_v60 = vrot.slane %v654_v49, %v662_v54  ;;  %v6032_v49 = vld [vmem:[#allocation2 + $0x8d8] ss:$24 sps:$4 sm:$0xff]   ;;  %v6038_v54 = vld [vmem:[#allocation2 + $0x8a8] ss:$24 sps:$4 sm:$0xff]  }
 0x10c   :  { %3907 = vmatprep.subr.bf16.mxu1 %v5929_v61 }
 0x10e   :  { %3867 = vmatpush1.bf16.msra.mxu0 %v5924_v62 }
 0x10f   :  { %3908 = vmatpush1.bf16.msra.mxu1 %v5927_v63  ;;  %3868 = vmatprep.subr.bf16.mxu0 %v5932_v0  ;;  %v5990_v63 = vld [vmem:[#allocation2 + $0x728] ss:$24 sps:$4 sm:$0xff]  }
 0x110   :  { %3909 = vmatprep.subr.bf16.mxu1 %v5935_v1  ;;  %v5993_v1 = vld [vmem:[#allocation2 + $0xa28] ss:$24 sps:$4 sm:$0xff]  }
 0x112   :  { %3869 = vmatpush1.bf16.msra.mxu0 %v5930_v2  ;;  %v5998_v2 = vld [vmem:[#allocation2 + $0x6fc] ss:$24 sps:$4 sm:$0xff]  }
 0x113   :  { %3910 = vmatpush1.bf16.msra.mxu1 %v5933_v3  ;;  %3870 = vmatprep.subr.bf16.mxu0 %v5938_v4 }
 0x114   :  { %3911 = vmatprep.subr.bf16.mxu1 %v5941_v5  ;;  %v6001_v5 = vld [vmem:[#allocation2 + $0x9fc] ss:$24 sps:$4 sm:$0xff]  }
 0x116   :  { %3871 = vmatpush2.bf16.msra.mxu0 %v5936_v8 }
 0x117   :  { %3912 = vmatpush2.bf16.msra.mxu1 %v5939_v9  ;;  %3872 = vmatprep.subr.bf16.mxu0 %v5944_v10 }
 0x118   :  { %3913 = vmatprep.subr.bf16.mxu1 %v5947_v11 }
 0x11a   :  { %3873 = vmatpush2.bf16.msra.mxu0 %v5942_v12  ;;  %v5996_v12 = vld [vmem:[#allocation2 + $0x6f8] ss:$24 sps:$4 sm:$0xff]  }
 0x11b   :  { %3914 = vmatpush2.bf16.msra.mxu1 %v5945_v13  ;;  %3874 = vmatprep.subr.bf16.mxu0 %v5950_v14  ;;  %v5999_v13 = vld [vmem:[#allocation2 + $0x9f8] ss:$24 sps:$4 sm:$0xff]  }
 0x11c   :  { %3915 = vmatprep.subr.bf16.mxu1 %v5953_v15 }
 0x11e   :  { %3875 = vmatpush2.bf16.msra.mxu0 %v5948_v18 }
 0x11f   :  { %3916 = vmatpush2.bf16.msra.mxu1 %v5951_v19  ;;  %3876 = vmatprep.subr.bf16.mxu0 %v5956_v20  ;;  %v6004_v19 = vld [vmem:[#allocation2 + $0x6cc] ss:$24 sps:$4 sm:$0xff]  }
 0x120   :  { %3917 = vmatprep.subr.bf16.mxu1 %v5959_v21  ;;  %v6007_v20 = vld [vmem:[#allocation2 + $0x9cc] ss:$24 sps:$4 sm:$0xff]   ;;  %v6002_v21 = vld [vmem:[#allocation2 + $0x6c8] ss:$24 sps:$4 sm:$0xff]  }
 0x122   :  { %3877 = vmatpush2.bf16.msra.mxu0 %v5954_v26  ;;  %v6005_v26 = vld [vmem:[#allocation2 + $0x9c8] ss:$24 sps:$4 sm:$0xff]  }
 0x123   :  { %3918 = vmatpush2.bf16.msra.mxu1 %v5957_v27  ;;  %3878 = vmatprep.subr.bf16.mxu0 %v5962_v28  ;;  %v6010_v27 = vld [vmem:[#allocation2 + $0x69c] ss:$24 sps:$4 sm:$0xff]  }
 0x124   :  { %3919 = vmatprep.subr.bf16.mxu1 %v5965_v29  ;;  %v6013_v28 = vld [vmem:[#allocation2 + $0x99c] ss:$24 sps:$4 sm:$0xff]   ;;  %v6008_v29 = vld [vmem:[#allocation2 + $0x698] ss:$24 sps:$4 sm:$0xff]  }
 0x126   :  { %3879 = vmatpush2.bf16.msra.mxu0 %v5960_v30  ;;  %v6011_v30 = vld [vmem:[#allocation2 + $0x998] ss:$24 sps:$4 sm:$0xff]  }
 0x127   :  { %3920 = vmatpush2.bf16.msra.mxu1 %v5963_v31  ;;  %3880 = vmatprep.subr.bf16.mxu0 %v5968_v32  ;;  %v6016_v31 = vld [vmem:[#allocation2 + $0x66c] ss:$24 sps:$4 sm:$0xff]  }
 0x128   :  { %3921 = vmatprep.subr.bf16.mxu1 %v5971_v33  ;;  %v6019_v32 = vld [vmem:[#allocation2 + $0x96c] ss:$24 sps:$4 sm:$0xff]   ;;  %v6014_v33 = vld [vmem:[#allocation2 + $0x668] ss:$24 sps:$4 sm:$0xff]  }
 0x12a   :  { %3881 = vmatpush2.bf16.msra.mxu0 %v5966_v38  ;;  %v6017_v38 = vld [vmem:[#allocation2 + $0x968] ss:$24 sps:$4 sm:$0xff]  }
 0x12b   :  { %3922 = vmatpush2.bf16.msra.mxu1 %v5969_v39  ;;  %3882 = vmatprep.subr.bf16.mxu0 %v5974_v40  ;;  %v6022_v39 = vld [vmem:[#allocation2 + $0x63c] ss:$24 sps:$4 sm:$0xff]  }
 0x12c   :  { %3923 = vmatprep.subr.bf16.mxu1 %v5977_v42  ;;  %v6025_v40 = vld [vmem:[#allocation2 + $0x93c] ss:$24 sps:$4 sm:$0xff]   ;;  %v6023_v42 = vld [vmem:[#allocation2 + $0x938] ss:$24 sps:$4 sm:$0xff]  }
 0x12e   :  { %3883 = vmatpush2.bf16.msra.mxu0 %v5972_v22  ;;  %v6028_v22 = vld [vmem:[#allocation2 + $0x60c] ss:$24 sps:$4 sm:$0xff]  }
 0x12f   :  { %3924 = vmatpush2.bf16.msra.mxu1 %v5975_v43  ;;  %3884 = vmatprep.subr.bf16.mxu0 %v5980_v23  ;;  %v6031_v43 = vld [vmem:[#allocation2 + $0x90c] ss:$24 sps:$4 sm:$0xff]   ;;  %v6026_v23 = vld [vmem:[#allocation2 + $0x608] ss:$24 sps:$4 sm:$0xff]  }
 0x130   :  { %3925 = vmatprep.subr.bf16.mxu1 %v5983_v45  ;;  %v6029_v45 = vld [vmem:[#allocation2 + $0x908] ss:$24 sps:$4 sm:$0xff]  }
 0x132   :  { %3885 = vmatpush2.bf16.msra.mxu0 %v5978_v46  ;;  %v6034_v46 = vld [vmem:[#allocation2 + $0x8dc] ss:$24 sps:$4 sm:$0xff]  }
 0x133   :  { %3926 = vmatpush2.bf16.msra.mxu1 %v5981_v48  ;;  %3936 = vmatprep.subr.bf16.mxu0 %v5986_v52  ;;  %v6037_v48 = vld [vmem:[#allocation2 + $0xbdc] ss:$24 sps:$4 sm:$0xff]   ;;  %v6040_v52 = vld [vmem:[#allocation2 + $0x8ac] ss:$24 sps:$4 sm:$0xff]  }
 0x134   :  { %3977 = vmatprep.subr.bf16.mxu1 %v5989_v53  ;;  %v6043_v53 = vld [vmem:[#allocation2 + $0xbac] ss:$24 sps:$4 sm:$0xff]  }
 0x135   :  { %v3642_v61 = vpop.f32.mrf.mxu0  ;;  %3887 = vmatmul.mubr.bf16.vlgmr.msra.gmra.mxu0 %v6673_v6 }
 0x136   :  { %v3683_v62 = vpop.f32.mrf.mxu1  ;;  %3928 = vmatmul.mubr.bf16.vlgmr.msra.gmra.mxu1 %v6675_v7  ;;  %v3643_v0 = vadd.f32 %v3642_v61, %v659_v56  ;;  %3937 = vmatpush1.bf16.msra.mxu0 %v5984_v55  ;;  %v6041_v55 = vld [vmem:[#allocation2 + $0xba8] ss:$24 sps:$4 sm:$0xff]   ;;  %v6046_v56 = vld [vmem:[#allocation2 + $0x87c] ss:$24 sps:$4 sm:$0xff]   ;;  %v6055_v61 = vld [vmem:[#allocation2 + $0xb4c] ss:$24 sps:$4 sm:$0xff]  }
 0x137   :  { %3978 = vmatpush1.bf16.msra.mxu1 %v5987_v57  ;;  %v3644_v3 = vpop.f32.mrf.mxu0  ;;  %3938 = vmatprep.subr.bf16.mxu0 %v5992_v58  ;;  %v6049_v57 = vld [vmem:[#allocation2 + $0xb7c] ss:$24 sps:$4 sm:$0xff]   ;;  %v6044_v58 = vld [vmem:[#allocation2 + $0x878] ss:$24 sps:$4 sm:$0xff]  }
 0x138   :  { %v3685_v4 = vpop.f32.mrf.mxu1  ;;  %3979 = vmatprep.subr.bf16.mxu1 %v5995_v59  ;;  %v6747_v8 = vadd.f32 %v3683_v62, %v3643_v0  ;;  %v3645_v9 = vadd.f32 %v3644_v3, %v663_v60  ;;  %3968 = vmatprep.mubr.bf16.mxu0 %v6691_v36  ;;  %v6047_v59 = vld [vmem:[#allocation2 + $0xb78] ss:$24 sps:$4 sm:$0xff]   ;;  %v6052_v60 = vld [vmem:[#allocation2 + $0x84c] ss:$24 sps:$4 sm:$0xff]   ;;  %v6050_v62 = vld [vmem:[#allocation2 + $0x848] ss:$24 sps:$4 sm:$0xff]  }
 0x139   :  { %4009 = vmatprep.mubr.bf16.mxu1 %v6695_v37  ;;  %v3646_v10 = vpop.f32.mrf.mxu0  ;;  %v6058_v0 = vld [vmem:[#allocation2 + $0x81c] ss:$24 sps:$4 sm:$0xff]   ;;  %v6059_v3 = vld [vmem:[#allocation2 + $0xb18] ss:$24 sps:$4 sm:$0xff]  }
 0x13a   :  { %v3687_v11 = vpop.f32.mrf.mxu1  ;;  %v6751_v14 = vadd.f32 %v3685_v4, %v3645_v9  ;;  %3939 = vmatpush1.bf16.msra.mxu0 %v5990_v63  ;;  %v6053_v63 = vld [vmem:[#allocation2 + $0xb48] ss:$24 sps:$4 sm:$0xff]   ;;  %v6064_v4 = vld [vmem:[#allocation2 + $0x7ec] ss:$24 sps:$4 sm:$0xff]  }
 0x13b   :  { %3980 = vmatpush1.bf16.msra.mxu1 %v5993_v1  ;;  %v3647_v15 = vpop.f32.mrf.mxu0  ;;  %3940 = vmatprep.subr.bf16.mxu0 %v5998_v2  ;;  %v6061_v1 = vld [vmem:[#allocation2 + $0xb1c] ss:$24 sps:$4 sm:$0xff]   ;;  %v6056_v2 = vld [vmem:[#allocation2 + $0x818] ss:$24 sps:$4 sm:$0xff]   ;;  %v6062_v9 = vld [vmem:[#allocation2 + $0x7e8] ss:$24 sps:$4 sm:$0xff]  }
 0x13c   :  { %v3688_v18 = vpop.f32.mrf.mxu1  ;;  %3981 = vmatprep.subr.bf16.mxu1 %v6001_v5  ;;  %v6067_v5 = vld [vmem:[#allocation2 + $0xaec] ss:$24 sps:$4 sm:$0xff]   ;;  %v6065_v10 = vld [vmem:[#allocation2 + $0xae8] ss:$24 sps:$4 sm:$0xff]   ;;  %v6070_v11 = vld [vmem:[#allocation2 + $0x7bc] ss:$24 sps:$4 sm:$0xff]  }
 0x13d   :  { %v6071_v15 = vld [vmem:[#allocation2 + $0xab8] ss:$24 sps:$4 sm:$0xff]   ;;  %v6076_v18 = vld [vmem:[#allocation2 + $0x78c] ss:$24 sps:$4 sm:$0xff]  }
 0x13e   :  { %3941 = vmatpush1.bf16.msra.mxu0 %v5996_v12  ;;  %v6073_v12 = vld [vmem:[#allocation2 + $0xabc] ss:$24 sps:$4 sm:$0xff]  }
 0x13f   :  { %3982 = vmatpush1.bf16.msra.mxu1 %v5999_v13  ;;  %3942 = vmatprep.subr.bf16.mxu0 %v6004_v19  ;;  %v6068_v13 = vld [vmem:[#allocation2 + $0x7b8] ss:$24 sps:$4 sm:$0xff]   ;;  %v6079_v19 = vld [vmem:[#allocation2 + $0xa8c] ss:$24 sps:$4 sm:$0xff]  }
 0x140   :  { %3983 = vmatprep.subr.bf16.mxu1 %v6007_v20  ;;  %v6074_v20 = vld [vmem:[#allocation2 + $0x788] ss:$24 sps:$4 sm:$0xff]  }
 0x142   :  { %3943 = vmatpush1.bf16.msra.mxu0 %v6002_v21  ;;  %v6077_v21 = vld [vmem:[#allocation2 + $0xa88] ss:$24 sps:$4 sm:$0xff]  }
 0x143   :  { %3984 = vmatpush1.bf16.msra.mxu1 %v6005_v26  ;;  %3944 = vmatprep.subr.bf16.mxu0 %v6010_v27  ;;  %v6082_v26 = vld [vmem:[#allocation2 + $0xd5c] ss:$24 sps:$4 sm:$0xff]  }
 0x144   :  { %3985 = vmatprep.subr.bf16.mxu1 %v6013_v28  ;;  %v6085_v27 = vld [vmem:[#allocation2 + $0x105c] ss:$24 sps:$4 sm:$0xff]   ;;  %v6080_v28 = vld [vmem:[#allocation2 + $0xd58] ss:$24 sps:$4 sm:$0xff]  }
 0x146   :  { %3945 = vmatpush1.bf16.msra.mxu0 %v6008_v29  ;;  %v6083_v29 = vld [vmem:[#allocation2 + $0x1058] ss:$24 sps:$4 sm:$0xff]  }
 0x147   :  { %3986 = vmatpush1.bf16.msra.mxu1 %v6011_v30  ;;  %3946 = vmatprep.subr.bf16.mxu0 %v6016_v31  ;;  %v6088_v30 = vld [vmem:[#allocation2 + $0xd2c] ss:$24 sps:$4 sm:$0xff]  }
 0x148   :  { %3987 = vmatprep.subr.bf16.mxu1 %v6019_v32  ;;  %v6091_v31 = vld [vmem:[#allocation2 + $0x102c] ss:$24 sps:$4 sm:$0xff]   ;;  %v6086_v32 = vld [vmem:[#allocation2 + $0xd28] ss:$24 sps:$4 sm:$0xff]  }
 0x14a   :  { %3947 = vmatpush1.bf16.msra.mxu0 %v6014_v33  ;;  %v6089_v33 = vld [vmem:[#allocation2 + $0x1028] ss:$24 sps:$4 sm:$0xff]  }
 0x14b   :  { %3988 = vmatpush1.bf16.msra.mxu1 %v6017_v38  ;;  %3948 = vmatprep.subr.bf16.mxu0 %v6022_v39 }
 0x14c   :  { %3989 = vmatprep.subr.bf16.mxu1 %v6025_v40 }
 0x14e   :  { %3949 = vmatpush1.bf16.msra.mxu0 %v6020_v41 }
 0x14f   :  { %3990 = vmatpush1.bf16.msra.mxu1 %v6023_v42  ;;  %3950 = vmatprep.subr.bf16.mxu0 %v6028_v22  ;;  %v6094_v22 = vld [vmem:[#allocation2 + $0xcfc] ss:$24 sps:$4 sm:$0xff]  }
 0x150   :  { %3991 = vmatprep.subr.bf16.mxu1 %v6031_v43  ;;  %v6097_v43 = vld [vmem:[#allocation2 + $0xffc] ss:$24 sps:$4 sm:$0xff]  }
 0x152   :  { %3951 = vmatpush1.bf16.msra.mxu0 %v6026_v23 }
 0x153   :  { %3992 = vmatpush1.bf16.msra.mxu1 %v6029_v45  ;;  %3952 = vmatprep.subr.bf16.mxu0 %v6034_v46  ;;  %v6092_v46 = vld [vmem:[#allocation2 + $0xcf8] ss:$24 sps:$4 sm:$0xff]  }
 0x154   :  { %3993 = vmatprep.subr.bf16.mxu1 %v6037_v48  ;;  %v6095_v48 = vld [vmem:[#allocation2 + $0xff8] ss:$24 sps:$4 sm:$0xff]  }
 0x156   :  { %3953 = vmatpush2.bf16.msra.mxu0 %v6032_v49 }
 0x157   :  { %3994 = vmatpush2.bf16.msra.mxu1 %v6035_v50  ;;  %3954 = vmatprep.subr.bf16.mxu0 %v6040_v52 }
 0x158   :  { %3995 = vmatprep.subr.bf16.mxu1 %v6043_v53 }
 0x15a   :  { %3955 = vmatpush2.bf16.msra.mxu0 %v6038_v54  ;;  %v6100_v54 = vld [vmem:[#allocation2 + $0xccc] ss:$24 sps:$4 sm:$0xff]  }
 0x15b   :  { %3996 = vmatpush2.bf16.msra.mxu1 %v6041_v55  ;;  %3956 = vmatprep.subr.bf16.mxu0 %v6046_v56  ;;  %v6103_v55 = vld [vmem:[#allocation2 + $0xfcc] ss:$24 sps:$4 sm:$0xff]   ;;  %v6101_v56 = vld [vmem:[#allocation2 + $0xfc8] ss:$24 sps:$4 sm:$0xff]  }
 0x15c   :  { %3997 = vmatprep.subr.bf16.mxu1 %v6049_v57  ;;  %v6106_v57 = vld [vmem:[#allocation2 + $0xc9c] ss:$24 sps:$4 sm:$0xff]  }
 0x15e   :  { %3957 = vmatpush2.bf16.msra.mxu0 %v6044_v58  ;;  %v6109_v58 = vld [vmem:[#allocation2 + $0xf9c] ss:$24 sps:$4 sm:$0xff]  }
 0x15f   :  { %3998 = vmatpush2.bf16.msra.mxu1 %v6047_v59  ;;  %3958 = vmatprep.subr.bf16.mxu0 %v6052_v60  ;;  %v6104_v59 = vld [vmem:[#allocation2 + $0xc98] ss:$24 sps:$4 sm:$0xff]  }
 0x160   :  { %3999 = vmatprep.subr.bf16.mxu1 %v6055_v61  ;;  %v6107_v60 = vld [vmem:[#allocation2 + $0xf98] ss:$24 sps:$4 sm:$0xff]   ;;  %v6112_v61 = vld [vmem:[#allocation2 + $0xc6c] ss:$24 sps:$4 sm:$0xff]  }
 0x162   :  { %3959 = vmatpush2.bf16.msra.mxu0 %v6050_v62  ;;  %v6115_v62 = vld [vmem:[#allocation2 + $0xf6c] ss:$24 sps:$4 sm:$0xff]  }
 0x163   :  { %4000 = vmatpush2.bf16.msra.mxu1 %v6053_v63  ;;  %3960 = vmatprep.subr.bf16.mxu0 %v6058_v0  ;;  %v6110_v63 = vld [vmem:[#allocation2 + $0xc68] ss:$24 sps:$4 sm:$0xff]  }
 0x164   :  { %4001 = vmatprep.subr.bf16.mxu1 %v6061_v1  ;;  %v6113_v0 = vld [vmem:[#allocation2 + $0xf68] ss:$24 sps:$4 sm:$0xff]   ;;  %v6118_v1 = vld [vmem:[#allocation2 + $0xc3c] ss:$24 sps:$4 sm:$0xff]  }
 0x166   :  { %3961 = vmatpush2.bf16.msra.mxu0 %v6056_v2  ;;  %v6121_v2 = vld [vmem:[#allocation2 + $0xf3c] ss:$24 sps:$4 sm:$0xff]  }
 0x167   :  { %4002 = vmatpush2.bf16.msra.mxu1 %v6059_v3  ;;  %3962 = vmatprep.subr.bf16.mxu0 %v6064_v4  ;;  %v6116_v3 = vld [vmem:[#allocation2 + $0xc38] ss:$24 sps:$4 sm:$0xff]  }
 0x168   :  { %4003 = vmatprep.subr.bf16.mxu1 %v6067_v5  ;;  %v6119_v4 = vld [vmem:[#allocation2 + $0xf38] ss:$24 sps:$4 sm:$0xff]   ;;  %v6124_v5 = vld [vmem:[#allocation2 + $0xc0c] ss:$24 sps:$4 sm:$0xff]  }
 0x16a   :  { %3963 = vmatpush2.bf16.msra.mxu0 %v6062_v9  ;;  %v6127_v9 = vld [vmem:[#allocation2 + $0xf0c] ss:$24 sps:$4 sm:$0xff]  }
 0x16b   :  { %4004 = vmatpush2.bf16.msra.mxu1 %v6065_v10  ;;  %3964 = vmatprep.subr.bf16.mxu0 %v6070_v11  ;;  %v6122_v10 = vld [vmem:[#allocation2 + $0xc08] ss:$24 sps:$4 sm:$0xff]  }
 0x16c   :  { %4005 = vmatprep.subr.bf16.mxu1 %v6073_v12  ;;  %v6125_v11 = vld [vmem:[#allocation2 + $0xf08] ss:$24 sps:$4 sm:$0xff]   ;;  %v6130_v12 = vld [vmem:[#allocation2 + $0xedc] ss:$24 sps:$4 sm:$0xff]  }
 0x16e   :  { %3965 = vmatpush2.bf16.msra.mxu0 %v6068_v13  ;;  %v6133_v13 = vld [vmem:[#allocation2 + $0x11dc] ss:$24 sps:$4 sm:$0xff]  }
 0x16f   :  { %4006 = vmatpush2.bf16.msra.mxu1 %v6071_v15  ;;  %3966 = vmatprep.subr.bf16.mxu0 %v6076_v18  ;;  %v6128_v15 = vld [vmem:[#allocation2 + $0xed8] ss:$24 sps:$4 sm:$0xff]  }
 0x170   :  { %4007 = vmatprep.subr.bf16.mxu1 %v6079_v19  ;;  %v6131_v18 = vld [vmem:[#allocation2 + $0x11d8] ss:$24 sps:$4 sm:$0xff]   ;;  %v6136_v19 = vld [vmem:[#allocation2 + $0xeac] ss:$24 sps:$4 sm:$0xff]  }
 0x172   :  { %3967 = vmatpush2.bf16.msra.mxu0 %v6074_v20  ;;  %v6139_v20 = vld [vmem:[#allocation2 + $0x11ac] ss:$24 sps:$4 sm:$0xff]  }
 0x173   :  { %4008 = vmatpush2.bf16.msra.mxu1 %v6077_v21  ;;  %4018 = vmatprep.subr.bf16.mxu0 %v6082_v26  ;;  %v6134_v21 = vld [vmem:[#allocation2 + $0xea8] ss:$24 sps:$4 sm:$0xff]  }
 0x174   :  { %4059 = vmatprep.subr.bf16.mxu1 %v6085_v27  ;;  %v6137_v26 = vld [vmem:[#allocation2 + $0x11a8] ss:$24 sps:$4 sm:$0xff]   ;;  %v6142_v27 = vld [vmem:[#allocation2 + $0xe7c] ss:$24 sps:$4 sm:$0xff]  }
 0x175   :  { %v3724_v38 = vpop.f32.mrf.mxu0  ;;  %3969 = vmatmul.mubr.bf16.vlgmr.msra.gmra.mxu0 %v6701_v16 }
 0x176   :  { %v3765_v39 = vpop.f32.mrf.mxu1  ;;  %4010 = vmatmul.mubr.bf16.vlgmr.msra.gmra.mxu1 %v6705_v17  ;;  %v3725_v40 = vadd.f32 %v3724_v38, %v6747_v8  ;;  %4019 = vmatpush1.bf16.msra.mxu0 %v6080_v28  ;;  %v6145_v28 = vld [vmem:[#allocation2 + $0x117c] ss:$24 sps:$4 sm:$0xff]   ;;  %v6149_v38 = vld [vmem:[#allocation2 + $0x1148] ss:$24 sps:$4 sm:$0xff]  }
 0x177   :  { %4060 = vmatpush1.bf16.msra.mxu1 %v6083_v29  ;;  %v3726_v41 = vpop.f32.mrf.mxu0  ;;  %4020 = vmatprep.subr.bf16.mxu0 %v6088_v30  ;;  %v6140_v29 = vld [vmem:[#allocation2 + $0xe78] ss:$24 sps:$4 sm:$0xff]  }
 0x178   :  { %v3767_v42 = vpop.f32.mrf.mxu1  ;;  %4061 = vmatprep.subr.bf16.mxu1 %v6091_v31  ;;  %v6756_v23 = vadd.f32 %v3765_v39, %v3725_v40  ;;  %v3727_v45 = vadd.f32 %v3726_v41, %v6751_v14  ;;  %4050 = vmatprep.mubr.bf16.mxu0 %v6719_v24  ;;  %v6098_v14 = vld [vmem:[#allocation2 + $0xcc8] ss:$24 sps:$4 sm:$0xff]   ;;  %v6143_v30 = vld [vmem:[#allocation2 + $0x1178] ss:$24 sps:$4 sm:$0xff]   ;;  %v6148_v31 = vld [vmem:[#allocation2 + $0xe4c] ss:$24 sps:$4 sm:$0xff]  }
 0x179   :  { %4091 = vmatprep.mubr.bf16.mxu1 %v6723_v25  ;;  %v3728_v49 = vpop.f32.mrf.mxu0  ;;  %v6154_v39 = vld [vmem:[#allocation2 + $0xe1c] ss:$24 sps:$4 sm:$0xff]   ;;  %v6152_v41 = vld [vmem:[#allocation2 + $0xe18] ss:$24 sps:$4 sm:$0xff]  }
 0x17a   :  { %v3769_v8 = vpop.f32.mrf.mxu1  ;;  %v6761_v50 = vadd.f32 %v3767_v42, %v3727_v45  ;;  %4021 = vmatpush1.bf16.msra.mxu0 %v6086_v32  ;;  %v6151_v32 = vld [vmem:[#allocation2 + $0x114c] ss:$24 sps:$4 sm:$0xff]   ;;  %v6157_v40 = vld [vmem:[#allocation2 + $0x111c] ss:$24 sps:$4 sm:$0xff]   ;;  %v6155_v42 = vld [vmem:[#allocation2 + $0x1118] ss:$24 sps:$4 sm:$0xff]  }
 0x17b   :  { %4062 = vmatpush1.bf16.msra.mxu1 %v6089_v33  ;;  %v3729_v52 = vpop.f32.mrf.mxu0  ;;  %4022 = vmatprep.subr.bf16.mxu0 %v6094_v22  ;;  %v6146_v33 = vld [vmem:[#allocation2 + $0xe48] ss:$24 sps:$4 sm:$0xff]   ;;  %v6160_v22 = vld [vmem:[#allocation2 + $0xdec] ss:$24 sps:$4 sm:$0xff]   ;;  %v6169_v49 = vld [vmem:[#allocation2 + $0x10bc] ss:$24 sps:$4 sm:$0xff]  }
 0x17c   :  { %v3770_v53 = vpop.f32.mrf.mxu1  ;;  %4063 = vmatprep.subr.bf16.mxu1 %v6097_v43  ;;  %v6163_v43 = vld [vmem:[#allocation2 + $0x10ec] ss:$24 sps:$4 sm:$0xff]   ;;  %v6158_v45 = vld [vmem:[#allocation2 + $0xde8] ss:$24 sps:$4 sm:$0xff]   ;;  %v6164_v8 = vld [vmem:[#allocation2 + $0xdb8] ss:$24 sps:$4 sm:$0xff]  }
 0x17d   :  { %v6167_v52 = vld [vmem:[#allocation2 + $0x10b8] ss:$24 sps:$4 sm:$0xff]   ;;  %v6172_v53 = vld [vmem:[#allocation2 + $0xd8c] ss:$24 sps:$4 sm:$0xff]  }
 0x17e   :  { %4023 = vmatpush1.bf16.msra.mxu0 %v6092_v46  ;;  %v6161_v46 = vld [vmem:[#allocation2 + $0x10e8] ss:$24 sps:$4 sm:$0xff]  }
 0x17f   :  { %4064 = vmatpush1.bf16.msra.mxu1 %v6095_v48  ;;  %4024 = vmatprep.subr.bf16.mxu0 %v6100_v54  ;;  %v6166_v48 = vld [vmem:[#allocation2 + $0xdbc] ss:$24 sps:$4 sm:$0xff]   ;;  %v6175_v54 = vld [vmem:[#allocation2 + $0x108c] ss:$24 sps:$4 sm:$0xff]  }
 0x180   :  { %4065 = vmatprep.subr.bf16.mxu1 %v6103_v55  ;;  %v6170_v55 = vld [vmem:[#allocation2 + $0xd88] ss:$24 sps:$4 sm:$0xff]  }
 0x182   :  { %4025 = vmatpush1.bf16.msra.mxu0 %v6098_v14  ;;  %v6173_v14 = vld [vmem:[#allocation2 + $0x1088] ss:$24 sps:$4 sm:$0xff]  }
 0x183   :  { %4066 = vmatpush1.bf16.msra.mxu1 %v6101_v56  ;;  %4026 = vmatprep.subr.bf16.mxu0 %v6106_v57  ;;  %v6178_v56 = vld [vmem:[#allocation2 + $0x164] ss:$24 sps:$4 sm:$0xff]  }
 0x184   :  { %4067 = vmatprep.subr.bf16.mxu1 %v6109_v58  ;;  %v6181_v57 = vld [vmem:[#allocation2 + $0x464] ss:$24 sps:$4 sm:$0xff]   ;;  %v6176_v58 = vld [vmem:[#allocation2 + $0x160] ss:$24 sps:$4 sm:$0xff]  }
 0x186   :  { %4027 = vmatpush1.bf16.msra.mxu0 %v6104_v59  ;;  %v6179_v59 = vld [vmem:[#allocation2 + $0x460] ss:$24 sps:$4 sm:$0xff]  }
 0x187   :  { %4068 = vmatpush1.bf16.msra.mxu1 %v6107_v60  ;;  %4028 = vmatprep.subr.bf16.mxu0 %v6112_v61  ;;  %v6184_v60 = vld [vmem:[#allocation2 + $0x134] ss:$24 sps:$4 sm:$0xff]  }
 0x188   :  { %4069 = vmatprep.subr.bf16.mxu1 %v6115_v62  ;;  %v6187_v61 = vld [vmem:[#allocation2 + $0x434] ss:$24 sps:$4 sm:$0xff]   ;;  %v6182_v62 = vld [vmem:[#allocation2 + $0x130] ss:$24 sps:$4 sm:$0xff]  }
 0x18a   :  { %4029 = vmatpush1.bf16.msra.mxu0 %v6110_v63  ;;  %v6185_v63 = vld [vmem:[#allocation2 + $0x430] ss:$24 sps:$4 sm:$0xff]  }
 0x18b   :  { %4070 = vmatpush1.bf16.msra.mxu1 %v6113_v0  ;;  %4030 = vmatprep.subr.bf16.mxu0 %v6118_v1 }
 0x18c   :  { %4071 = vmatprep.subr.bf16.mxu1 %v6121_v2 }
 0x18e   :  { %4031 = vmatpush1.bf16.msra.mxu0 %v6116_v3 }
 0x18f   :  { %4072 = vmatpush1.bf16.msra.mxu1 %v6119_v4  ;;  %4032 = vmatprep.subr.bf16.mxu0 %v6124_v5  ;;  %v6190_v5 = vld [vmem:[#allocation2 + $0x104] ss:$24 sps:$4 sm:$0xff]  }
 0x190   :  { %4073 = vmatprep.subr.bf16.mxu1 %v6127_v9  ;;  %v6193_v9 = vld [vmem:[#allocation2 + $0x404] ss:$24 sps:$4 sm:$0xff]  }
 0x192   :  { %4033 = vmatpush1.bf16.msra.mxu0 %v6122_v10 }
 0x193   :  { %4074 = vmatpush1.bf16.msra.mxu1 %v6125_v11  ;;  %4034 = vmatprep.subr.bf16.mxu0 %v6130_v12  ;;  %v6188_v12 = vld [vmem:[#allocation2 + $0x100] ss:$24 sps:$4 sm:$0xff]  }
 0x194   :  { %4075 = vmatprep.subr.bf16.mxu1 %v6133_v13  ;;  %v6191_v13 = vld [vmem:[#allocation2 + $0x400] ss:$24 sps:$4 sm:$0xff]  }
 0x196   :  { %4035 = vmatpush2.bf16.msra.mxu0 %v6128_v15 }
 0x197   :  { %4076 = vmatpush2.bf16.msra.mxu1 %v6131_v18  ;;  %4036 = vmatprep.subr.bf16.mxu0 %v6136_v19 }
 0x198   :  { %4077 = vmatprep.subr.bf16.mxu1 %v6139_v20 }
 0x19a   :  { %4037 = vmatpush2.bf16.msra.mxu0 %v6134_v21  ;;  %v6196_v21 = vld [vmem:[#allocation2 + $0xd4] ss:$24 sps:$4 sm:$0xff]  }
 0x19b   :  { %4078 = vmatpush2.bf16.msra.mxu1 %v6137_v26  ;;  %4038 = vmatprep.subr.bf16.mxu0 %v6142_v27  ;;  %v6199_v26 = vld [vmem:[#allocation2 + $0x3d4] ss:$24 sps:$4 sm:$0xff]   ;;  %v6197_v27 = vld [vmem:[#allocation2 + $0x3d0] ss:$24 sps:$4 sm:$0xff]  }
 0x19c   :  { %4079 = vmatprep.subr.bf16.mxu1 %v6145_v28  ;;  %v6200_v28 = vld [vmem:[#allocation2 + $0xa0] ss:$24 sps:$4 sm:$0xff]  }
 0x19e   :  { %4039 = vmatpush2.bf16.msra.mxu0 %v6140_v29  ;;  %v6203_v29 = vld [vmem:[#allocation2 + $0x3a0] ss:$24 sps:$4 sm:$0xff]  }
 0x19f   :  { %4080 = vmatpush2.bf16.msra.mxu1 %v6143_v30  ;;  %4040 = vmatprep.subr.bf16.mxu0 %v6148_v31  ;;  %v6208_v30 = vld [vmem:[#allocation2 + $0x74] ss:$24 sps:$4 sm:$0xff]  }
 0x1a0   :  { %4081 = vmatprep.subr.bf16.mxu1 %v6151_v32  ;;  %v6211_v31 = vld [vmem:[#allocation2 + $0x374] ss:$24 sps:$4 sm:$0xff]   ;;  %v6206_v32 = vld [vmem:[#allocation2 + $0x70] ss:$24 sps:$4 sm:$0xff]  }
 0x1a2   :  { %4041 = vmatpush2.bf16.msra.mxu0 %v6146_v33  ;;  %v6209_v33 = vld [vmem:[#allocation2 + $0x370] ss:$24 sps:$4 sm:$0xff]  }
 0x1a3   :  { %4082 = vmatpush2.bf16.msra.mxu1 %v6149_v38  ;;  %4042 = vmatprep.subr.bf16.mxu0 %v6154_v39  ;;  %v6214_v38 = vld [vmem:[#allocation2 + $0x44] ss:$24 sps:$4 sm:$0xff]  }
 0x1a4   :  { %4083 = vmatprep.subr.bf16.mxu1 %v6157_v40  ;;  %v6217_v39 = vld [vmem:[#allocation2 + $0x344] ss:$24 sps:$4 sm:$0xff]   ;;  %v6212_v40 = vld [vmem:[#allocation2 + $0x40] ss:$24 sps:$4 sm:$0xff]  }
 0x1a6   :  { %4043 = vmatpush2.bf16.msra.mxu0 %v6152_v41  ;;  %v6215_v41 = vld [vmem:[#allocation2 + $0x340] ss:$24 sps:$4 sm:$0xff]  }
 0x1a7   :  { %4084 = vmatpush2.bf16.msra.mxu1 %v6155_v42  ;;  %4044 = vmatprep.subr.bf16.mxu0 %v6160_v22  ;;  %v6220_v42 = vld [vmem:[#allocation2 + $0x14] ss:$24 sps:$4 sm:$0xff]  }
 0x1a8   :  { %4085 = vmatprep.subr.bf16.mxu1 %v6163_v43  ;;  %v6223_v22 = vld [vmem:[#allocation2 + $0x314] ss:$24 sps:$4 sm:$0xff]   ;;  %v6218_v43 = vld [vmem:[#allocation2 + $0x10] ss:$24 sps:$4 sm:$0xff]  }
 0x1aa   :  { %4045 = vmatpush2.bf16.msra.mxu0 %v6158_v45  ;;  %v6221_v45 = vld [vmem:[#allocation2 + $0x310] ss:$24 sps:$4 sm:$0xff]  }
 0x1ab   :  { %4086 = vmatpush2.bf16.msra.mxu1 %v6161_v46  ;;  %4046 = vmatprep.subr.bf16.mxu0 %v6166_v48  ;;  %v6226_v46 = vld [vmem:[#allocation2 + $0x2e4] ss:$24 sps:$4 sm:$0xff]  }
 0x1ac   :  { %4087 = vmatprep.subr.bf16.mxu1 %v6169_v49  ;;  %v6229_v48 = vld [vmem:[#allocation2 + $0x5e4] ss:$24 sps:$4 sm:$0xff]   ;;  %v6224_v49 = vld [vmem:[#allocation2 + $0x2e0] ss:$24 sps:$4 sm:$0xff]  }
 0x1ae   :  { %4047 = vmatpush2.bf16.msra.mxu0 %v6164_v8  ;;  %v6227_v8 = vld [vmem:[#allocation2 + $0x5e0] ss:$24 sps:$4 sm:$0xff]  }
 0x1af   :  { %4088 = vmatpush2.bf16.msra.mxu1 %v6167_v52  ;;  %4048 = vmatprep.subr.bf16.mxu0 %v6172_v53  ;;  %v6232_v52 = vld [vmem:[#allocation2 + $0x2b4] ss:$24 sps:$4 sm:$0xff]  }
 0x1b0   :  { %4089 = vmatprep.subr.bf16.mxu1 %v6175_v54  ;;  %v6235_v53 = vld [vmem:[#allocation2 + $0x5b4] ss:$24 sps:$4 sm:$0xff]   ;;  %v6230_v54 = vld [vmem:[#allocation2 + $0x2b0] ss:$24 sps:$4 sm:$0xff]  }
 0x1b2   :  { %4049 = vmatpush2.bf16.msra.mxu0 %v6170_v55  ;;  %v6233_v55 = vld [vmem:[#allocation2 + $0x5b0] ss:$24 sps:$4 sm:$0xff]  }
 0x1b3   :  { %4090 = vmatpush2.bf16.msra.mxu1 %v6173_v14  ;;  %4100 = vmatprep.subr.bf16.mxu0 %v6178_v56  ;;  %v6238_v14 = vld [vmem:[#allocation2 + $0x284] ss:$24 sps:$4 sm:$0xff]  }
 0x1b4   :  { %4141 = vmatprep.subr.bf16.mxu1 %v6181_v57  ;;  %v6241_v56 = vld [vmem:[#allocation2 + $0x584] ss:$24 sps:$4 sm:$0xff]   ;;  %v6236_v57 = vld [vmem:[#allocation2 + $0x280] ss:$24 sps:$4 sm:$0xff]  }
 0x1b5   :  { %v3806_v0 = vpop.f32.mrf.mxu0  ;;  %4051 = vmatmul.mubr.bf16.vlgmr.msra.gmra.mxu0 %v6731_v34 }
 0x1b6   :  { %v3847_v1 = vpop.f32.mrf.mxu1  ;;  %4092 = vmatmul.mubr.bf16.vlgmr.msra.gmra.mxu1 %v6735_v35  ;;  %v3807_v2 = vadd.f32 %v3806_v0, %v6756_v23  ;;  %4101 = vmatpush1.bf16.msra.mxu0 %v6176_v58  ;;  %v6239_v58 = vld [vmem:[#allocation2 + $0x580] ss:$24 sps:$4 sm:$0xff]   ;;  %v6253_v0 = vld [vmem:[#allocation2 + $0x524] ss:$24 sps:$4 sm:$0xff]  }
 0x1b7   :  { %4142 = vmatpush1.bf16.msra.mxu1 %v6179_v59  ;;  %v3808_v3 = vpop.f32.mrf.mxu0  ;;  %4102 = vmatprep.subr.bf16.mxu0 %v6184_v60  ;;  %v6244_v59 = vld [vmem:[#allocation2 + $0x254] ss:$24 sps:$4 sm:$0xff]  }
 0x1b8   :  { %v3849_v4 = vpop.f32.mrf.mxu1  ;;  %4143 = vmatprep.subr.bf16.mxu1 %v6187_v61  ;;  %v6766_v10 = vadd.f32 %v3847_v1, %v3807_v2  ;;  %v3809_v11 = vadd.f32 %v3808_v3, %v6761_v50  ;;  %4132 = vmatprep.mubr.bf16.mxu0 %v6664_v47  ;;  %v6194_v50 = vld [vmem:[#allocation2 + $0xd0] ss:$24 sps:$4 sm:$0xff]   ;;  %v6202_v47 = vld [vmem:[#allocation2 + $0xa4] ss:$24 sps:$4 sm:$0xff]   ;;  %v6247_v60 = vld [vmem:[#allocation2 + $0x554] ss:$24 sps:$4 sm:$0xff]  }
 0x1b9   :  { %4173 = vmatprep.mubr.bf16.mxu1 %v6669_v51  ;;  %v3810_v15 = vpop.f32.mrf.mxu0  ;;  %v6205_v51 = vld [vmem:[#allocation2 + $0x3a4] ss:$24 sps:$4 sm:$0xff]   ;;  %v6242_v61 = vld [vmem:[#allocation2 + $0x250] ss:$24 sps:$4 sm:$0xff]   ;;  %v6248_v1 = vld [vmem:[#allocation2 + $0x220] ss:$24 sps:$4 sm:$0xff]  }
 0x1ba   :  { %v3851_v23 = vpop.f32.mrf.mxu1  ;;  %v6771_v18 = vadd.f32 %v3849_v4, %v3809_v11  ;;  %4103 = vmatpush1.bf16.msra.mxu0 %v6182_v62  ;;  %v6245_v62 = vld [vmem:[#allocation2 + $0x550] ss:$24 sps:$4 sm:$0xff]   ;;  %v6251_v2 = vld [vmem:[#allocation2 + $0x520] ss:$24 sps:$4 sm:$0xff]   ;;  %v6256_v3 = vld [vmem:[#allocation2 + $0x1f4] ss:$24 sps:$4 sm:$0xff]  }
 0x1bb   :  { %4144 = vmatpush1.bf16.msra.mxu1 %v6185_v63  ;;  %v3811_v19 = vpop.f32.mrf.mxu0  ;;  %4104 = vmatprep.subr.bf16.mxu0 %v6190_v5  ;;  %v6250_v63 = vld [vmem:[#allocation2 + $0x224] ss:$24 sps:$4 sm:$0xff]   ;;  %v6259_v4 = vld [vmem:[#allocation2 + $0x4f4] ss:$24 sps:$4 sm:$0xff]   ;;  %v6254_v5 = vld [vmem:[#allocation2 + $0x1f0] ss:$24 sps:$4 sm:$0xff]  }
 0x1bc   :  { %v3852_v20 = vpop.f32.mrf.mxu1  ;;  %4145 = vmatprep.subr.bf16.mxu1 %v6193_v9  ;;  %v6257_v9 = vld [vmem:[#allocation2 + $0x4f0] ss:$24 sps:$4 sm:$0xff]   ;;  %v6262_v11 = vld [vmem:[#allocation2 + $0x1c4] ss:$24 sps:$4 sm:$0xff]   ;;  %v6263_v15 = vld [vmem:[#allocation2 + $0x4c0] ss:$24 sps:$4 sm:$0xff]   ;;  %6512 = vtanh.f32 %v6771_v18 }
 0x1bd   :  { %v6268_v23 = vld [vmem:[#allocation2 + $0x194] ss:$24 sps:$4 sm:$0xff]   ;;  %v6266_v20 = vld [vmem:[#allocation2 + $0x190] ss:$24 sps:$4 sm:$0xff]  }
 0x1be   :  { %4105 = vmatpush1.bf16.msra.mxu0 %v6188_v12  ;;  %v6265_v12 = vld [vmem:[#allocation2 + $0x4c4] ss:$24 sps:$4 sm:$0xff]   ;;  %v6271_v19 = vld [vmem:[#allocation2 + $0x494] ss:$24 sps:$4 sm:$0xff]   ;;  %v6461_v18 = vld [vmem:[#allocation2 + $0x1090] ss:$24 sps:$4 sm:$0xff]  }
 0x1bf   :  { %4146 = vmatpush1.bf16.msra.mxu1 %v6191_v13  ;;  %4106 = vmatprep.subr.bf16.mxu0 %v6196_v21  ;;  %v6260_v13 = vld [vmem:[#allocation2 + $0x1c0] ss:$24 sps:$4 sm:$0xff]   ;;  %v6269_v21 = vld [vmem:[#allocation2 + $0x490] ss:$24 sps:$4 sm:$0xff]  }
 0x1c0   :  { %4147 = vmatprep.subr.bf16.mxu1 %v6199_v26  ;;  %v666_v26 = vsub.s32 2, %v6741_v44 }
 0x1c2   :  { %4107 = vmatpush1.bf16.msra.mxu0 %v6194_v50  ;;  %v6274_v50 = vld [vmem:[#allocation2 + $0x764] ss:$24 sps:$4 sm:$0xff]  }
 0x1c3   :  { %4148 = vmatpush1.bf16.msra.mxu1 %v6197_v27  ;;  %4108 = vmatprep.subr.bf16.mxu0 %v6202_v47  ;;  %v6277_v27 = vld [vmem:[#allocation2 + $0xa64] ss:$24 sps:$4 sm:$0xff]   ;;  %v670_v47 = vsub.s32 3, %v6741_v44 }
 0x1c4   :  { %4149 = vmatprep.subr.bf16.mxu1 %v6205_v51  ;;  %v6775_v51 = vld [vmem:[#allocation4] sm:$0x3f] }
 0x1c6   :  { %4109 = vmatpush1.bf16.msra.mxu0 %v6200_v28  ;;  %v667_v28 = vrot.slane %v6775_v51, %v666_v26  ;;  %v6326_v26 = vld [vmem:[#allocation2 + $0x8b0] ss:$24 sps:$4 sm:$0xff]  }
 0x1c7   :  { %4150 = vmatpush1.bf16.msra.mxu1 %v6203_v29  ;;  %4110 = vmatprep.subr.bf16.mxu0 %v6208_v30  ;;  %v6272_v29 = vld [vmem:[#allocation2 + $0x760] ss:$24 sps:$4 sm:$0xff]  }
 0x1c8   :  { %4151 = vmatprep.subr.bf16.mxu1 %v6211_v31  ;;  %v6275_v30 = vld [vmem:[#allocation2 + $0xa60] ss:$24 sps:$4 sm:$0xff]   ;;  %v6280_v31 = vld [vmem:[#allocation2 + $0x734] ss:$24 sps:$4 sm:$0xff]  }
 0x1ca   :  { %4111 = vmatpush1.bf16.msra.mxu0 %v6206_v32  ;;  %v6283_v32 = vld [vmem:[#allocation2 + $0xa34] ss:$24 sps:$4 sm:$0xff]  }
 0x1cb   :  { %4152 = vmatpush1.bf16.msra.mxu1 %v6209_v33  ;;  %4112 = vmatprep.subr.bf16.mxu0 %v6214_v38  ;;  %v671_v33 = vrot.slane %v6775_v51, %v670_v47  ;;  %v6337_v47 = vld [vmem:[#allocation2 + $0xb84] ss:$24 sps:$4 sm:$0xff]  }
 0x1cc   :  { %4153 = vmatprep.subr.bf16.mxu1 %v6217_v39 }
 0x1ce   :  { %4113 = vmatpush1.bf16.msra.mxu0 %v6212_v40 }
 0x1cf   :  { %4154 = vmatpush1.bf16.msra.mxu1 %v6215_v41  ;;  %4114 = vmatprep.subr.bf16.mxu0 %v6220_v42  ;;  %v6278_v41 = vld [vmem:[#allocation2 + $0x730] ss:$24 sps:$4 sm:$0xff]  }
 0x1d0   :  { %4155 = vmatprep.subr.bf16.mxu1 %v6223_v22  ;;  %v6281_v42 = vld [vmem:[#allocation2 + $0xa30] ss:$24 sps:$4 sm:$0xff]  }
 0x1d2   :  { %4115 = vmatpush1.bf16.msra.mxu0 %v6218_v43 }
 0x1d3   :  { %4156 = vmatpush1.bf16.msra.mxu1 %v6221_v45  ;;  %4116 = vmatprep.subr.bf16.mxu0 %v6226_v46  ;;  %v6286_v45 = vld [vmem:[#allocation2 + $0x704] ss:$24 sps:$4 sm:$0xff]  }
 0x1d4   :  { %4157 = vmatprep.subr.bf16.mxu1 %v6229_v48  ;;  %v6289_v46 = vld [vmem:[#allocation2 + $0xa04] ss:$24 sps:$4 sm:$0xff]  }
 0x1d6   :  { %4117 = vmatpush2.bf16.msra.mxu0 %v6224_v49 }
 0x1d7   :  { %4158 = vmatpush2.bf16.msra.mxu1 %v6227_v8  ;;  %4118 = vmatprep.subr.bf16.mxu0 %v6232_v52  ;;  %v6284_v52 = vld [vmem:[#allocation2 + $0x700] ss:$24 sps:$4 sm:$0xff]  }
 0x1d8   :  { %4159 = vmatprep.subr.bf16.mxu1 %v6235_v53  ;;  %v6287_v53 = vld [vmem:[#allocation2 + $0xa00] ss:$24 sps:$4 sm:$0xff]  }
 0x1da   :  { %4119 = vmatpush2.bf16.msra.mxu0 %v6230_v54 }
 0x1db   :  { %4160 = vmatpush2.bf16.msra.mxu1 %v6233_v55  ;;  %4120 = vmatprep.subr.bf16.mxu0 %v6238_v14  ;;  %v6292_v14 = vld [vmem:[#allocation2 + $0x6d4] ss:$24 sps:$4 sm:$0xff]  }
 0x1dc   :  { %4161 = vmatprep.subr.bf16.mxu1 %v6241_v56  ;;  %v6295_v56 = vld [vmem:[#allocation2 + $0x9d4] ss:$24 sps:$4 sm:$0xff]  }
 0x1de   :  { %4121 = vmatpush2.bf16.msra.mxu0 %v6236_v57  ;;  %v6290_v57 = vld [vmem:[#allocation2 + $0x6d0] ss:$24 sps:$4 sm:$0xff]  }
 0x1df   :  { %4162 = vmatpush2.bf16.msra.mxu1 %v6239_v58  ;;  %4122 = vmatprep.subr.bf16.mxu0 %v6244_v59  ;;  %v6301_v58 = vld [vmem:[#allocation2 + $0x9a4] ss:$24 sps:$4 sm:$0xff]   ;;  %v6296_v59 = vld [vmem:[#allocation2 + $0x6a0] ss:$24 sps:$4 sm:$0xff]  }
 0x1e0   :  { %4163 = vmatprep.subr.bf16.mxu1 %v6247_v60  ;;  %v6299_v60 = vld [vmem:[#allocation2 + $0x9a0] ss:$24 sps:$4 sm:$0xff]  }
 0x1e2   :  { %4123 = vmatpush2.bf16.msra.mxu0 %v6242_v61  ;;  %v6304_v61 = vld [vmem:[#allocation2 + $0x674] ss:$24 sps:$4 sm:$0xff]  }
 0x1e3   :  { %4164 = vmatpush2.bf16.msra.mxu1 %v6245_v62  ;;  %4124 = vmatprep.subr.bf16.mxu0 %v6250_v63  ;;  %v6307_v62 = vld [vmem:[#allocation2 + $0x974] ss:$24 sps:$4 sm:$0xff]   ;;  %v6302_v63 = vld [vmem:[#allocation2 + $0x670] ss:$24 sps:$4 sm:$0xff]  }
 0x1e4   :  { %4165 = vmatprep.subr.bf16.mxu1 %v6253_v0  ;;  %v6305_v0 = vld [vmem:[#allocation2 + $0x970] ss:$24 sps:$4 sm:$0xff]  }
 0x1e6   :  { %4125 = vmatpush2.bf16.msra.mxu0 %v6248_v1  ;;  %v6310_v1 = vld [vmem:[#allocation2 + $0x644] ss:$24 sps:$4 sm:$0xff]  }
 0x1e7   :  { %4166 = vmatpush2.bf16.msra.mxu1 %v6251_v2  ;;  %4126 = vmatprep.subr.bf16.mxu0 %v6256_v3  ;;  %v6313_v2 = vld [vmem:[#allocation2 + $0x944] ss:$24 sps:$4 sm:$0xff]   ;;  %v6308_v3 = vld [vmem:[#allocation2 + $0x640] ss:$24 sps:$4 sm:$0xff]  }
 0x1e8   :  { %4167 = vmatprep.subr.bf16.mxu1 %v6259_v4  ;;  %v6311_v4 = vld [vmem:[#allocation2 + $0x940] ss:$24 sps:$4 sm:$0xff]  }
 0x1ea   :  { %4127 = vmatpush2.bf16.msra.mxu0 %v6254_v5  ;;  %v6316_v5 = vld [vmem:[#allocation2 + $0x614] ss:$24 sps:$4 sm:$0xff]  }
 0x1eb   :  { %4168 = vmatpush2.bf16.msra.mxu1 %v6257_v9  ;;  %4128 = vmatprep.subr.bf16.mxu0 %v6262_v11  ;;  %v6319_v9 = vld [vmem:[#allocation2 + $0x914] ss:$24 sps:$4 sm:$0xff]   ;;  %v6314_v11 = vld [vmem:[#allocation2 + $0x610] ss:$24 sps:$4 sm:$0xff]  }
 0x1ec   :  { %4169 = vmatprep.subr.bf16.mxu1 %v6265_v12  ;;  %v6317_v12 = vld [vmem:[#allocation2 + $0x910] ss:$24 sps:$4 sm:$0xff]  }
 0x1ee   :  { %4129 = vmatpush2.bf16.msra.mxu0 %v6260_v13  ;;  %v6322_v13 = vld [vmem:[#allocation2 + $0x8e4] ss:$24 sps:$4 sm:$0xff]  }
 0x1ef   :  { %4170 = vmatpush2.bf16.msra.mxu1 %v6263_v15  ;;  %4130 = vmatprep.subr.bf16.mxu0 %v6268_v23  ;;  %v6325_v15 = vld [vmem:[#allocation2 + $0xbe4] ss:$24 sps:$4 sm:$0xff]   ;;  %v6320_v23 = vld [vmem:[#allocation2 + $0x8e0] ss:$24 sps:$4 sm:$0xff]  }
 0x1f0   :  { %4171 = vmatprep.subr.bf16.mxu1 %v6271_v19  ;;  %v6323_v19 = vld [vmem:[#allocation2 + $0xbe0] ss:$24 sps:$4 sm:$0xff]  }
 0x1f2   :  { %4131 = vmatpush2.bf16.msra.mxu0 %v6266_v20  ;;  %v6328_v20 = vld [vmem:[#allocation2 + $0x8b4] ss:$24 sps:$4 sm:$0xff]  }
 0x1f3   :  { %4172 = vmatpush2.bf16.msra.mxu1 %v6269_v21  ;;  %4182 = vmatprep.subr.bf16.mxu0 %v6274_v50  ;;  %v6331_v21 = vld [vmem:[#allocation2 + $0xbb4] ss:$24 sps:$4 sm:$0xff]   ;;  %v6329_v50 = vld [vmem:[#allocation2 + $0xbb0] ss:$24 sps:$4 sm:$0xff]  }
 0x1f4   :  { %4223 = vmatprep.subr.bf16.mxu1 %v6277_v27  ;;  %v6334_v27 = vld [vmem:[#allocation2 + $0x884] ss:$24 sps:$4 sm:$0xff]  }
 0x1f5   :  { %v3888_v38 = vpop.f32.mrf.mxu0  ;;  %4133 = vmatmul.mubr.bf16.vlgmr.msra.gmra.mxu0 %v6673_v6 }
 0x1f6   :  { %v3929_v39 = vpop.f32.mrf.mxu1  ;;  %4174 = vmatmul.mubr.bf16.vlgmr.msra.gmra.mxu1 %v6675_v7  ;;  %v3889_v40 = vadd.f32 %v3888_v38, %v667_v28  ;;  %4183 = vmatpush1.bf16.msra.mxu0 %v6272_v29  ;;  %v6332_v28 = vld [vmem:[#allocation2 + $0x880] ss:$24 sps:$4 sm:$0xff]   ;;  %v6346_v38 = vld [vmem:[#allocation2 + $0x824] ss:$24 sps:$4 sm:$0xff]  }
 0x1f7   :  { %4224 = vmatpush1.bf16.msra.mxu1 %v6275_v30  ;;  %v3890_v22 = vpop.f32.mrf.mxu0  ;;  %4184 = vmatprep.subr.bf16.mxu0 %v6280_v31  ;;  %v6335_v29 = vld [vmem:[#allocation2 + $0xb80] ss:$24 sps:$4 sm:$0xff]   ;;  %v6340_v30 = vld [vmem:[#allocation2 + $0x854] ss:$24 sps:$4 sm:$0xff]  }
 0x1f8   :  { %v3931_v43 = vpop.f32.mrf.mxu1  ;;  %4225 = vmatprep.subr.bf16.mxu1 %v6283_v32  ;;  %v6781_v48 = vadd.f32 %v3929_v39, %v3889_v40  ;;  %v3891_v49 = vadd.f32 %v3890_v22, %v671_v33  ;;  %4214 = vmatprep.mubr.bf16.mxu0 %v6691_v36  ;;  %v6293_v36 = vld [vmem:[#allocation2 + $0x9d0] ss:$24 sps:$4 sm:$0xff]   ;;  %v6343_v31 = vld [vmem:[#allocation2 + $0xb54] ss:$24 sps:$4 sm:$0xff]   ;;  %v6349_v39 = vld [vmem:[#allocation2 + $0xb24] ss:$24 sps:$4 sm:$0xff]  }
 0x1f9   :  { %4255 = vmatprep.mubr.bf16.mxu1 %v6695_v37  ;;  %v3892_v6 = vpop.f32.mrf.mxu0  ;;  %v6298_v37 = vld [vmem:[#allocation2 + $0x6a4] ss:$24 sps:$4 sm:$0xff]   ;;  %v6338_v32 = vld [vmem:[#allocation2 + $0x850] ss:$24 sps:$4 sm:$0xff]   ;;  %v6344_v40 = vld [vmem:[#allocation2 + $0x820] ss:$24 sps:$4 sm:$0xff]  }
 0x1fa   :  { %v3933_v7 = vpop.f32.mrf.mxu1  ;;  %v6785_v8 = vadd.f32 %v3931_v43, %v3891_v49  ;;  %4185 = vmatpush1.bf16.msra.mxu0 %v6278_v41  ;;  %v6341_v33 = vld [vmem:[#allocation2 + $0xb50] ss:$24 sps:$4 sm:$0xff]   ;;  %v6347_v41 = vld [vmem:[#allocation2 + $0xb20] ss:$24 sps:$4 sm:$0xff]   ;;  %v6355_v22 = vld [vmem:[#allocation2 + $0xaf4] ss:$24 sps:$4 sm:$0xff]  }
 0x1fb   :  { %4226 = vmatpush1.bf16.msra.mxu1 %v6281_v42  ;;  %v3893_v54 = vpop.f32.mrf.mxu0  ;;  %4186 = vmatprep.subr.bf16.mxu0 %v6286_v45  ;;  %v6352_v42 = vld [vmem:[#allocation2 + $0x7f4] ss:$24 sps:$4 sm:$0xff]   ;;  %v6350_v43 = vld [vmem:[#allocation2 + $0x7f0] ss:$24 sps:$4 sm:$0xff]   ;;  %v6361_v49 = vld [vmem:[#allocation2 + $0xac4] ss:$24 sps:$4 sm:$0xff]  }
 0x1fc   :  { %v3934_v55 = vpop.f32.mrf.mxu1  ;;  %4227 = vmatprep.subr.bf16.mxu1 %v6289_v46  ;;  %v6353_v45 = vld [vmem:[#allocation2 + $0xaf0] ss:$24 sps:$4 sm:$0xff]   ;;  %v6358_v46 = vld [vmem:[#allocation2 + $0x7c4] ss:$24 sps:$4 sm:$0xff]   ;;  %v6356_v6 = vld [vmem:[#allocation2 + $0x7c0] ss:$24 sps:$4 sm:$0xff]  }
 0x1fd   :  { %v6359_v7 = vld [vmem:[#allocation2 + $0xac0] ss:$24 sps:$4 sm:$0xff]   ;;  %v6362_v54 = vld [vmem:[#allocation2 + $0x790] ss:$24 sps:$4 sm:$0xff]  }
 0x1fe   :  { %4187 = vmatpush1.bf16.msra.mxu0 %v6284_v52  ;;  %v6364_v52 = vld [vmem:[#allocation2 + $0x794] ss:$24 sps:$4 sm:$0xff]   ;;  %v6365_v55 = vld [vmem:[#allocation2 + $0xa90] ss:$24 sps:$4 sm:$0xff]  }
 0x1ff   :  { %4228 = vmatpush1.bf16.msra.mxu1 %v6287_v53  ;;  %4188 = vmatprep.subr.bf16.mxu0 %v6292_v14  ;;  %v6367_v53 = vld [vmem:[#allocation2 + $0xa94] ss:$24 sps:$4 sm:$0xff]   ;;  %v6370_v14 = vld [vmem:[#allocation2 + $0xd64] ss:$24 sps:$4 sm:$0xff]  }
 0x200   :  { %4229 = vmatprep.subr.bf16.mxu1 %v6295_v56  ;;  %v6373_v56 = vld [vmem:[#allocation2 + $0x1064] ss:$24 sps:$4 sm:$0xff]  }
 0x202   :  { %4189 = vmatpush1.bf16.msra.mxu0 %v6290_v57  ;;  %v6368_v57 = vld [vmem:[#allocation2 + $0xd60] ss:$24 sps:$4 sm:$0xff]  }
 0x203   :  { %4230 = vmatpush1.bf16.msra.mxu1 %v6293_v36  ;;  %4190 = vmatprep.subr.bf16.mxu0 %v6298_v37  ;;  %v6371_v36 = vld [vmem:[#allocation2 + $0x1060] ss:$24 sps:$4 sm:$0xff]   ;;  %v6376_v37 = vld [vmem:[#allocation2 + $0xd34] ss:$24 sps:$4 sm:$0xff]  }
 0x204   :  { %4231 = vmatprep.subr.bf16.mxu1 %v6301_v58  ;;  %v6379_v58 = vld [vmem:[#allocation2 + $0x1034] ss:$24 sps:$4 sm:$0xff]  }
 0x206   :  { %4191 = vmatpush1.bf16.msra.mxu0 %v6296_v59 }
 0x207   :  { %4232 = vmatpush1.bf16.msra.mxu1 %v6299_v60  ;;  %4192 = vmatprep.subr.bf16.mxu0 %v6304_v61 }
 0x208   :  { %4233 = vmatprep.subr.bf16.mxu1 %v6307_v62  ;;  %v6374_v62 = vld [vmem:[#allocation2 + $0xd30] ss:$24 sps:$4 sm:$0xff]  }
 0x20a   :  { %4193 = vmatpush1.bf16.msra.mxu0 %v6302_v63  ;;  %v6377_v63 = vld [vmem:[#allocation2 + $0x1030] ss:$24 sps:$4 sm:$0xff]  }
 0x20b   :  { %4234 = vmatpush1.bf16.msra.mxu1 %v6305_v0  ;;  %4194 = vmatprep.subr.bf16.mxu0 %v6310_v1 }
 0x20c   :  { %4235 = vmatprep.subr.bf16.mxu1 %v6313_v2  ;;  %v6382_v2 = vld [vmem:[#allocation2 + $0xd04] ss:$24 sps:$4 sm:$0xff]  }
 0x20e   :  { %4195 = vmatpush1.bf16.msra.mxu0 %v6308_v3  ;;  %v6385_v3 = vld [vmem:[#allocation2 + $0x1004] ss:$24 sps:$4 sm:$0xff]  }
 0x20f   :  { %4236 = vmatpush1.bf16.msra.mxu1 %v6311_v4  ;;  %4196 = vmatprep.subr.bf16.mxu0 %v6316_v5  ;;  %v6383_v5 = vld [vmem:[#allocation2 + $0x1000] ss:$24 sps:$4 sm:$0xff]  }
 0x210   :  { %4237 = vmatprep.subr.bf16.mxu1 %v6319_v9 }
 0x212   :  { %4197 = vmatpush1.bf16.msra.mxu0 %v6314_v11 }
 0x213   :  { %4238 = vmatpush1.bf16.msra.mxu1 %v6317_v12  ;;  %4198 = vmatprep.subr.bf16.mxu0 %v6322_v13  ;;  %v6388_v12 = vld [vmem:[#allocation2 + $0xcd4] ss:$24 sps:$4 sm:$0xff]  }
 0x214   :  { %4239 = vmatprep.subr.bf16.mxu1 %v6325_v15  ;;  %v6391_v13 = vld [vmem:[#allocation2 + $0xfd4] ss:$24 sps:$4 sm:$0xff]   ;;  %v6386_v15 = vld [vmem:[#allocation2 + $0xcd0] ss:$24 sps:$4 sm:$0xff]  }
 0x216   :  { %4199 = vmatpush2.bf16.msra.mxu0 %v6320_v23  ;;  %v6389_v23 = vld [vmem:[#allocation2 + $0xfd0] ss:$24 sps:$4 sm:$0xff]  }
 0x217   :  { %4240 = vmatpush2.bf16.msra.mxu1 %v6323_v19  ;;  %4200 = vmatprep.subr.bf16.mxu0 %v6328_v20  ;;  %v6392_v19 = vld [vmem:[#allocation2 + $0xca0] ss:$24 sps:$4 sm:$0xff]  }
 0x218   :  { %4241 = vmatprep.subr.bf16.mxu1 %v6331_v21  ;;  %v6395_v20 = vld [vmem:[#allocation2 + $0xfa0] ss:$24 sps:$4 sm:$0xff]   ;;  %v6400_v21 = vld [vmem:[#allocation2 + $0xc74] ss:$24 sps:$4 sm:$0xff]  }
 0x21a   :  { %4201 = vmatpush2.bf16.msra.mxu0 %v6326_v26  ;;  %v6403_v26 = vld [vmem:[#allocation2 + $0xf74] ss:$24 sps:$4 sm:$0xff]  }
 0x21b   :  { %4242 = vmatpush2.bf16.msra.mxu1 %v6329_v50  ;;  %4202 = vmatprep.subr.bf16.mxu0 %v6334_v27  ;;  %v6398_v50 = vld [vmem:[#allocation2 + $0xc70] ss:$24 sps:$4 sm:$0xff]  }
 0x21c   :  { %4243 = vmatprep.subr.bf16.mxu1 %v6337_v47  ;;  %v6401_v27 = vld [vmem:[#allocation2 + $0xf70] ss:$24 sps:$4 sm:$0xff]   ;;  %v6406_v47 = vld [vmem:[#allocation2 + $0xc44] ss:$24 sps:$4 sm:$0xff]  }
 0x21e   :  { %4203 = vmatpush2.bf16.msra.mxu0 %v6332_v28  ;;  %v6409_v28 = vld [vmem:[#allocation2 + $0xf44] ss:$24 sps:$4 sm:$0xff]  }
 0x21f   :  { %4244 = vmatpush2.bf16.msra.mxu1 %v6335_v29  ;;  %4204 = vmatprep.subr.bf16.mxu0 %v6340_v30  ;;  %v6404_v29 = vld [vmem:[#allocation2 + $0xc40] ss:$24 sps:$4 sm:$0xff]  }
 0x220   :  { %4245 = vmatprep.subr.bf16.mxu1 %v6343_v31  ;;  %v6407_v30 = vld [vmem:[#allocation2 + $0xf40] ss:$24 sps:$4 sm:$0xff]   ;;  %v6412_v31 = vld [vmem:[#allocation2 + $0xc14] ss:$24 sps:$4 sm:$0xff]  }
 0x222   :  { %4205 = vmatpush2.bf16.msra.mxu0 %v6338_v32  ;;  %v6415_v32 = vld [vmem:[#allocation2 + $0xf14] ss:$24 sps:$4 sm:$0xff]  }
 0x223   :  { %4246 = vmatpush2.bf16.msra.mxu1 %v6341_v33  ;;  %4206 = vmatprep.subr.bf16.mxu0 %v6346_v38  ;;  %v6410_v33 = vld [vmem:[#allocation2 + $0xc10] ss:$24 sps:$4 sm:$0xff]  }
 0x224   :  { %4247 = vmatprep.subr.bf16.mxu1 %v6349_v39  ;;  %v6413_v38 = vld [vmem:[#allocation2 + $0xf10] ss:$24 sps:$4 sm:$0xff]   ;;  %v6418_v39 = vld [vmem:[#allocation2 + $0xee4] ss:$24 sps:$4 sm:$0xff]  }
 0x226   :  { %4207 = vmatpush2.bf16.msra.mxu0 %v6344_v40  ;;  %v6421_v40 = vld [vmem:[#allocation2 + $0x11e4] ss:$24 sps:$4 sm:$0xff]  }
 0x227   :  { %4248 = vmatpush2.bf16.msra.mxu1 %v6347_v41  ;;  %4208 = vmatprep.subr.bf16.mxu0 %v6352_v42  ;;  %v6416_v41 = vld [vmem:[#allocation2 + $0xee0] ss:$24 sps:$4 sm:$0xff]  }
 0x228   :  { %4249 = vmatprep.subr.bf16.mxu1 %v6355_v22  ;;  %v6419_v42 = vld [vmem:[#allocation2 + $0x11e0] ss:$24 sps:$4 sm:$0xff]   ;;  %v6424_v22 = vld [vmem:[#allocation2 + $0xeb4] ss:$24 sps:$4 sm:$0xff]  }
 0x22a   :  { %4209 = vmatpush2.bf16.msra.mxu0 %v6350_v43  ;;  %v6427_v43 = vld [vmem:[#allocation2 + $0x11b4] ss:$24 sps:$4 sm:$0xff]  }
 0x22b   :  { %4250 = vmatpush2.bf16.msra.mxu1 %v6353_v45  ;;  %4210 = vmatprep.subr.bf16.mxu0 %v6358_v46  ;;  %v6422_v45 = vld [vmem:[#allocation2 + $0xeb0] ss:$24 sps:$4 sm:$0xff]  }
 0x22c   :  { %4251 = vmatprep.subr.bf16.mxu1 %v6361_v49  ;;  %v6425_v46 = vld [vmem:[#allocation2 + $0x11b0] ss:$24 sps:$4 sm:$0xff]   ;;  %v6430_v49 = vld [vmem:[#allocation2 + $0xe84] ss:$24 sps:$4 sm:$0xff]  }
 0x22e   :  { %4211 = vmatpush2.bf16.msra.mxu0 %v6356_v6  ;;  %v6433_v6 = vld [vmem:[#allocation2 + $0x1184] ss:$24 sps:$4 sm:$0xff]  }
 0x22f   :  { %4252 = vmatpush2.bf16.msra.mxu1 %v6359_v7  ;;  %4212 = vmatprep.subr.bf16.mxu0 %v6364_v52  ;;  %v6428_v7 = vld [vmem:[#allocation2 + $0xe80] ss:$24 sps:$4 sm:$0xff]  }
 0x230   :  { %4253 = vmatprep.subr.bf16.mxu1 %v6367_v53  ;;  %v6431_v52 = vld [vmem:[#allocation2 + $0x1180] ss:$24 sps:$4 sm:$0xff]   ;;  %v6436_v53 = vld [vmem:[#allocation2 + $0xe54] ss:$24 sps:$4 sm:$0xff]  }
 0x232   :  { %4213 = vmatpush2.bf16.msra.mxu0 %v6362_v54  ;;  %v6439_v54 = vld [vmem:[#allocation2 + $0x1154] ss:$24 sps:$4 sm:$0xff]  }
 0x233   :  { %4254 = vmatpush2.bf16.msra.mxu1 %v6365_v55  ;;  %4264 = vmatprep.subr.bf16.mxu0 %v6370_v14  ;;  %v6434_v55 = vld [vmem:[#allocation2 + $0xe50] ss:$24 sps:$4 sm:$0xff]  }
 0x234   :  { %4305 = vmatprep.subr.bf16.mxu1 %v6373_v56  ;;  %v6437_v14 = vld [vmem:[#allocation2 + $0x1150] ss:$24 sps:$4 sm:$0xff]   ;;  %v6442_v56 = vld [vmem:[#allocation2 + $0xe24] ss:$24 sps:$4 sm:$0xff]  }
 0x235   :  { %v3970_v59 = vpop.f32.mrf.mxu0  ;;  %4215 = vmatmul.mubr.bf16.vlgmr.msra.gmra.mxu0 %v6701_v16 }
 0x236   :  { %v4011_v60 = vpop.f32.mrf.mxu1  ;;  %4256 = vmatmul.mubr.bf16.vlgmr.msra.gmra.mxu1 %v6705_v17  ;;  %v3971_v61 = vadd.f32 %v3970_v59, %v6781_v48  ;;  %4265 = vmatpush1.bf16.msra.mxu0 %v6368_v57  ;;  %v6380_v48 = vld [vmem:[#allocation2 + $0xd00] ss:$24 sps:$4 sm:$0xff]   ;;  %v6445_v57 = vld [vmem:[#allocation2 + $0x1124] ss:$24 sps:$4 sm:$0xff]   ;;  %v6451_v59 = vld [vmem:[#allocation2 + $0x10f4] ss:$24 sps:$4 sm:$0xff]  }
 0x237   :  { %4306 = vmatpush1.bf16.msra.mxu1 %v6371_v36  ;;  %v6790_v0 = vpop.f32.mrf.mxu0  ;;  %4266 = vmatprep.subr.bf16.mxu0 %v6376_v37  ;;  %v6440_v36 = vld [vmem:[#allocation2 + $0xe20] ss:$24 sps:$4 sm:$0xff]  }
 0x238   :  { %v6792_v1 = vpop.f32.mrf.mxu1  ;;  %4307 = vmatprep.subr.bf16.mxu1 %v6379_v58  ;;  %v6794_v4 = vadd.f32 %v4011_v60, %v3971_v61  ;;  %4296 = vmatprep.mubr.bf16.mxu0 %v6719_v24  ;;  %v6394_v24 = vld [vmem:[#allocation2 + $0xca4] ss:$24 sps:$4 sm:$0xff]   ;;  %v6443_v37 = vld [vmem:[#allocation2 + $0x1120] ss:$24 sps:$4 sm:$0xff]   ;;  %v6448_v58 = vld [vmem:[#allocation2 + $0xdf4] ss:$24 sps:$4 sm:$0xff]  }
 0x239   :  { %4337 = vmatprep.mubr.bf16.mxu1 %v6723_v25  ;;  %v3974_v16 = vpop.f32.mrf.mxu0  ;;  %v6397_v25 = vld [vmem:[#allocation2 + $0xfa4] ss:$24 sps:$4 sm:$0xff]   ;;  %v6446_v60 = vld [vmem:[#allocation2 + $0xdf0] ss:$24 sps:$4 sm:$0xff]  }
 0x23a   :  { %v4015_v17 = vpop.f32.mrf.mxu1  ;;  %4267 = vmatpush1.bf16.msra.mxu0 %v6374_v62  ;;  %v6449_v61 = vld [vmem:[#allocation2 + $0x10f0] ss:$24 sps:$4 sm:$0xff]   ;;  %v6454_v62 = vld [vmem:[#allocation2 + $0xdc4] ss:$24 sps:$4 sm:$0xff]   ;;  %v6460_v16 = vld [vmem:[#allocation2 + $0xd94] ss:$24 sps:$4 sm:$0xff]  }
 0x23b   :  { %4308 = vmatpush1.bf16.msra.mxu1 %v6377_v63  ;;  %v3975_v9 = vpop.f32.mrf.mxu0  ;;  %4268 = vmatprep.subr.bf16.mxu0 %v6382_v2  ;;  %v6457_v63 = vld [vmem:[#allocation2 + $0x10c4] ss:$24 sps:$4 sm:$0xff]   ;;  %v6452_v2 = vld [vmem:[#allocation2 + $0xdc0] ss:$24 sps:$4 sm:$0xff]   ;;  %v6463_v17 = vld [vmem:[#allocation2 + $0x1094] ss:$24 sps:$4 sm:$0xff]  }
 0x23c   :  { %v4016_v11 = vpop.f32.mrf.mxu1  ;;  %4309 = vmatprep.subr.bf16.mxu1 %v6385_v3  ;;  %v6455_v3 = vld [vmem:[#allocation2 + $0x10c0] ss:$24 sps:$4 sm:$0xff]  }
 0x23d   :  { %v6465_v9 = vld [vmem:[#allocation6 + $0xf8] sm:$0xff]   ;;  %v6513_v11 = vpop.eup %6512 }
 0x23e   :  { %4269 = vmatpush1.bf16.msra.mxu0 %v6380_v48  ;;  %v6458_v48 = vld [vmem:[#allocation2 + $0xd90] ss:$24 sps:$4 sm:$0xff]  }
 0x23f   :  { %4310 = vmatpush1.bf16.msra.mxu1 %v6383_v5  ;;  %4270 = vmatprep.subr.bf16.mxu0 %v6388_v12  ;;  %v6464_v5 = vld [vmem:[#allocation6 + $0x78] sm:$0xff]   ;;  %v3973_v12 = vadd.f32 %v6790_v0, %v6785_v8  ;;  %v6470_v8 = vld [vmem:[#allocation6 + $0x30] sm:$0xff]  }
 0x240   :  { %4311 = vmatprep.subr.bf16.mxu1 %v6391_v13  ;;  %v6466_v13 = vld [vmem:[#allocation6 + $0x38] sm:$0xff]  }
 0x242   :  { %4271 = vmatpush1.bf16.msra.mxu0 %v6386_v15  ;;  %v6467_v15 = vld [vmem:[#allocation6 + $0xb8] sm:$0xff]  }
 0x243   :  { %4312 = vmatpush1.bf16.msra.mxu1 %v6389_v23  ;;  %4272 = vmatprep.subr.bf16.mxu0 %v6394_v24  ;;  %v6468_v23 = vld [vmem:[#allocation6 + $0x70] sm:$0xff]   ;;  %v4353_v24 = vpack.c.bf16 %v6513_v11, %v6513_v11 }
 0x244   :  { %4313 = vmatprep.subr.bf16.mxu1 %v6397_v25  ;;  %v6469_v25 = vld [vmem:[#allocation6 + $0xf0] sm:$0xff]  }
 0x246   :  { %4273 = vmatpush1.bf16.msra.mxu0 %v6392_v19 }
 0x247   :  { %4314 = vmatpush1.bf16.msra.mxu1 %v6395_v20  ;;  %4274 = vmatprep.subr.bf16.mxu0 %v6400_v21  ;;  %v4014_v21 = vadd.f32 %v6792_v1, %v3973_v12  ;;  %v6501_v12 = vld [vmem:[#allocation6 + $0x128] sm:$0xff]  }
 0x248   :  { %4315 = vmatprep.subr.bf16.mxu1 %v6403_v26 }
 0x24a   :  { %4275 = vmatpush1.bf16.msra.mxu0 %v6398_v50  ;;  %v6471_v50 = vld [vmem:[#allocation6 + $0xb0] sm:$0xff]  }
 0x24b   :  { %4316 = vmatpush1.bf16.msra.mxu1 %v6401_v27  ;;  %4276 = vmatprep.subr.bf16.mxu0 %v6406_v47  ;;  %v6472_v27 = vld [vmem:[#allocation6 + $0x68] sm:$0xff]  }
 0x24c   :  { %4317 = vmatprep.subr.bf16.mxu1 %v6409_v28  ;;  %v6473_v28 = vld [vmem:[#allocation6 + $0xe8] sm:$0xff]  }
 0x24e   :  { %4277 = vmatpush1.bf16.msra.mxu0 %v6404_v29 }
 0x24f   :  { %4318 = vmatpush1.bf16.msra.mxu1 %v6407_v30  ;;  %4278 = vmatprep.subr.bf16.mxu0 %v6412_v31 }
 0x250   :  { %4319 = vmatprep.subr.bf16.mxu1 %v6415_v32  ;;  %v6475_v32 = vld [vmem:[#allocation6 + $0xa8] sm:$0xff]  }
 0x252   :  { %4279 = vmatpush1.bf16.msra.mxu0 %v6410_v33  ;;  %v6476_v33 = vld [vmem:[#allocation6 + $0x60] sm:$0xff]  }
 0x253   :  { %4320 = vmatpush1.bf16.msra.mxu1 %v6413_v38  ;;  %4280 = vmatprep.subr.bf16.mxu0 %v6418_v39  ;;  %v6477_v39 = vld [vmem:[#allocation6 + $0xe0] sm:$0xff]  }
 0x254   :  { %4321 = vmatprep.subr.bf16.mxu1 %v6421_v40  ;;  %v6478_v40 = vld [vmem:[#allocation6 + $0x20] sm:$0xff]  }
 0x256   :  { %4281 = vmatpush2.bf16.msra.mxu0 %v6416_v41  ;;  %v6479_v41 = vld [vmem:[#allocation6 + $0xa0] sm:$0xff]  }
 0x257   :  { %4322 = vmatpush2.bf16.msra.mxu1 %v6419_v42  ;;  %4282 = vmatprep.subr.bf16.mxu0 %v6424_v22  ;;  %v6480_v42 = vld [vmem:[#allocation6 + $0x58] sm:$0xff]  }
 0x258   :  { %4323 = vmatprep.subr.bf16.mxu1 %v6427_v43  ;;  %v6481_v43 = vld [vmem:[#allocation6 + $0xd8] sm:$0xff]  }
 0x25a   :  { %4283 = vmatpush2.bf16.msra.mxu0 %v6422_v45  ;;  %v6482_v45 = vld [vmem:[#allocation6 + $0x18] sm:$0xff]  }
 0x25b   :  { %4324 = vmatpush2.bf16.msra.mxu1 %v6425_v46  ;;  %4284 = vmatprep.subr.bf16.mxu0 %v6430_v49  ;;  %v6483_v46 = vld [vmem:[#allocation6 + $0x98] sm:$0xff]   ;;  %v6485_v49 = vld [vmem:[#allocation6 + $0xd0] sm:$0xff]  }
 0x25c   :  { %4325 = vmatprep.subr.bf16.mxu1 %v6433_v6  ;;  %v6486_v6 = vld [vmem:[#allocation6 + $0x10] sm:$0xff]  }
 0x25e   :  { %4285 = vmatpush2.bf16.msra.mxu0 %v6428_v7  ;;  %v6487_v7 = vld [vmem:[#allocation6 + $0x90] sm:$0xff]  }
 0x25f   :  { %4326 = vmatpush2.bf16.msra.mxu1 %v6431_v52  ;;  %4286 = vmatprep.subr.bf16.mxu0 %v6436_v53  ;;  %v6488_v52 = vld [vmem:[#allocation6 + $0x48] sm:$0xff]  }
 0x260   :  { %4327 = vmatprep.subr.bf16.mxu1 %v6439_v54  ;;  %v6489_v53 = vld [vmem:[#allocation6 + $0xc8] sm:$0xff]  }
 0x262   :  { %4287 = vmatpush2.bf16.msra.mxu0 %v6434_v55 }
 0x263   :  { %4328 = vmatpush2.bf16.msra.mxu1 %v6437_v14  ;;  %4288 = vmatprep.subr.bf16.mxu0 %v6442_v56  ;;  %v6490_v14 = vld [vmem:[#allocation6 + $0x8] sm:$0xff]   ;;  %v6492_v56 = vld [vmem:[#allocation6 + $0x40] sm:$0xff]  }
 0x264   :  { %4329 = vmatprep.subr.bf16.mxu1 %v6445_v57  ;;  %v6493_v57 = vld [vmem:[#allocation6 + $0xc0] sm:$0xff]  }
 0x266   :  { %4289 = vmatpush2.bf16.msra.mxu0 %v6440_v36  ;;  %v6494_v36 = vld [vmem:[#allocation6] sm:$0xff]  }
 0x267   :  { %4330 = vmatpush2.bf16.msra.mxu1 %v6443_v37  ;;  %4290 = vmatprep.subr.bf16.mxu0 %v6448_v58  ;;  %v6495_v37 = vld [vmem:[#allocation6 + $0x80] sm:$0xff]   ;;  %v6496_v58 = vld [vmem:[#allocation6 + $0x178] sm:$0xff]  }
 0x268   :  { %4331 = vmatprep.subr.bf16.mxu1 %v6451_v59 }
 0x26a   :  { %4291 = vmatpush2.bf16.msra.mxu0 %v6446_v60 }
 0x26b   :  { %4332 = vmatpush2.bf16.msra.mxu1 %v6449_v61  ;;  %4292 = vmatprep.subr.bf16.mxu0 %v6454_v62  ;;  %v6497_v61 = vld [vmem:[#allocation6 + $0x138] sm:$0xff]  }
 0x26c   :  { %4333 = vmatprep.subr.bf16.mxu1 %v6457_v63  ;;  %v6498_v63 = vld [vmem:[#allocation6 + $0x170] sm:$0xff]  }
 0x26e   :  { %4293 = vmatpush2.bf16.msra.mxu0 %v6452_v2 }
 0x26f   :  { %4334 = vmatpush2.bf16.msra.mxu1 %v6455_v3  ;;  %4294 = vmatprep.subr.bf16.mxu0 %v6460_v16  ;;  %v6499_v3 = vld [vmem:[#allocation6 + $0x130] sm:$0xff]   ;;  %v674_v16 = vsub.s32 4, %v6741_v44 }
 0x270   :  { %4335 = vmatprep.subr.bf16.mxu1 %v6463_v17  ;;  %v678_v17 = vsub.s32 5, %v6741_v44 }
 0x272   :  { %4295 = vmatpush2.bf16.msra.mxu0 %v6458_v48  ;;  %v675_v48 = vrot.slane %v6775_v51, %v674_v16 }
 0x273   :  { %4336 = vmatpush2.bf16.msra.mxu1 %v6461_v18  ;;  %5514 = vmatprep.subr.bf16.mxu0 %v6464_v5  ;;  %v679_v18 = vrot.slane %v6775_v51, %v678_v17  ;;  %v6500_v5 = vld [vmem:[#allocation6 + $0x168] sm:$0xff]   ;;  %v6504_v51 = vld [vmem:[#allocation6 + $0x158] sm:$0xff]  }
 0x274   :  { %5536 = vmatprep.subr.bf16.mxu1 %v6465_v9 }
 0x275   :  { %v4052_v19 = vpop.f32.mrf.mxu0  ;;  %4297 = vmatmul.mubr.bf16.vlgmr.msra.gmra.mxu0 %v6731_v34  ;;  %v6474_v34 = vld [vmem:[#allocation6 + $0x28] sm:$0xff]  }
 0x276   :  { %v4093_v20 = vpop.f32.mrf.mxu1  ;;  %4338 = vmatmul.mubr.bf16.vlgmr.msra.gmra.mxu1 %v6735_v35  ;;  %5515 = vmatpush3.bf16.msra.mxu0 %v6466_v13  ;;  %v4053_v38 = vadd.f32 %v4052_v19, %v6794_v4  ;;  %v6484_v4 = vld [vmem:[#allocation6 + $0x50] sm:$0xff]   ;;  %v6502_v19 = vld [vmem:[#allocation6 + $0x160] sm:$0xff]  }
 0x277   :  { %4781 = vmatprep.mubr.bf16.mxu0 %v4353_v24  ;;  %5537 = vmatpush3.bf16.msra.mxu1 %v6467_v15  ;;  %v4054_v0 = vpop.f32.mrf.mxu0 }
 0x278   :  { %v4095_v26 = vpop.f32.mrf.mxu1  ;;  %5516 = vmatprep.subr.bf16.mxu0 %v6468_v23  ;;  %v4055_v47 = vadd.f32 %v4054_v0, %v4014_v21  ;;  %5538 = vmatprep.subr.bf16.mxu1 %v6469_v25  ;;  %v4094_v22 = vadd.f32 %v4093_v20, %v4053_v38 }
 0x279   :  { %v4056_v29 = vpop.f32.mrf.mxu0 }
 0x27a   :  { %v4097_v30 = vpop.f32.mrf.mxu1  ;;  %v4096_v31 = vadd.f32 %v4095_v26, %v4055_v47  ;;  %5517 = vmatpush3.bf16.msra.mxu0 %v6470_v8  ;;  %v6503_v8 = vld [vmem:[#allocation6 + $0x120] sm:$0xff]   ;;  %v6507_v47 = vld [vmem:[#allocation6 + $0x110] sm:$0xff]   ;;  %v6509_v29 = vld [vmem:[#allocation6 + $0x108] sm:$0xff]  }
 0x27b   :  { %5539 = vmatpush3.bf16.msra.mxu1 %v6471_v50  ;;  %v4057_v35 = vpop.f32.mrf.mxu0  ;;  %5518 = vmatprep.subr.bf16.mxu0 %v6472_v27  ;;  %v6505_v50 = vld [vmem:[#allocation6 + $0x118] sm:$0xff]   ;;  %v6506_v27 = vld [vmem:[#allocation6 + $0x150] sm:$0xff]   ;;  %v6510_v30 = vld [vmem:[#allocation6 + $0x140] sm:$0xff]  }
 0x27c   :  { %v4098_v1 = vpop.f32.mrf.mxu1  ;;  %6514 = vtanh.f32 %v4096_v31  ;;  %5540 = vmatprep.subr.bf16.mxu1 %v6473_v28  ;;  %v6508_v28 = vld [vmem:[#allocation6 + $0x148] sm:$0xff]   ;;  %v6511_v31 = vld [vmem:[#allocation6 + $0x100] sm:$0xff]  }
 0x27d   :  { %6516 = vtanh.f32 %v6766_v10  ;;  %v6491_v10 = vld [vmem:[#allocation6 + $0x88] sm:$0xff]  }
 0x27e   :  { %5519 = vmatpush3.bf16.msra.mxu0 %v6474_v34  ;;  %6518 = vtanh.f32 %v4094_v22 }
 0x27f   :  { %5541 = vmatpush3.bf16.msra.mxu1 %v6475_v32  ;;  %5520 = vmatprep.subr.bf16.mxu0 %v6476_v33 }
 0x280   :  { %5542 = vmatprep.subr.bf16.mxu1 %v6477_v39 }
 0x282   :  { %5521 = vmatpush3.bf16.msra.mxu0 %v6478_v40 }
 0x283   :  { %5543 = vmatpush3.bf16.msra.mxu1 %v6479_v41  ;;  %5522 = vmatprep.subr.bf16.mxu0 %v6480_v42 }
 0x284   :  { %5544 = vmatprep.subr.bf16.mxu1 %v6481_v43 }
 0x286   :  { %5523 = vmatpush3.bf16.msra.mxu0 %v6482_v45 }
 0x287   :  { %5545 = vmatpush3.bf16.msra.mxu1 %v6483_v46  ;;  %5524 = vmatprep.subr.bf16.mxu0 %v6484_v4 }
 0x288   :  { %5546 = vmatprep.subr.bf16.mxu1 %v6485_v49 }
 0x289   :  { %v6515_v54 = vpop.eup %6514 }
 0x28a   :  { %5525 = vmatpush3.bf16.msra.mxu0 %v6486_v6  ;;  %v4355_v55 = vpack.c.bf16 %v6515_v54, %v6515_v54  ;;  %v6517_v59 = vpop.eup %6516 }
 0x28b   :  { %5547 = vmatpush3.bf16.msra.mxu1 %v6487_v7  ;;  %5526 = vmatprep.subr.bf16.mxu0 %v6488_v52  ;;  %v6519_v60 = vpop.eup %6518  ;;  %v4352_v62 = vpack.c.bf16 %v6517_v59, %v6517_v59 }
 0x28c   :  { %4821 = vmatprep.mubr.bf16.mxu1 %v4355_v55  ;;  %5548 = vmatprep.subr.bf16.mxu1 %v6489_v53  ;;  %v4354_v2 = vpack.c.bf16 %v6519_v60, %v6519_v60  ;;  %v5465_v60 = vld [vmem:[#allocation7] ss:$0 sm:$0xff] }
 0x28e   :  { %5527 = vmatpush3.bf16.msra.mxu0 %v6490_v14 }
 0x28f   :  { %5549 = vmatpush3.bf16.msra.mxu1 %v6491_v10  ;;  %5528 = vmatprep.subr.bf16.mxu0 %v6492_v56 }
 0x290   :  { %5550 = vmatprep.subr.bf16.mxu1 %v6493_v57 }
 0x292   :  { %5529 = vmatpush3.bf16.msra.mxu0 %v6494_v36 }
 0x293   :  { %5551 = vmatpush3.bf16.msra.mxu1 %v6495_v37  ;;  %5558 = vmatprep.subr.bf16.mxu0 %v6496_v58 }
 0x295   :  { %4782 = vmatmul.mubr.bf16.vlgmr.msra.gmra.mxu0 %v4352_v62 }
 0x296   :  { %4822 = vmatmul.mubr.bf16.vlgmr.msra.gmra.mxu1 %v4354_v2  ;;  %5559 = vmatpush3.bf16.msra.mxu0 %v6497_v61 }
 0x297   :  { %5560 = vmatprep.subr.bf16.mxu0 %v6498_v63 }
 0x29a   :  { %5561 = vmatpush3.bf16.msra.mxu0 %v6499_v3 }
 0x29b   :  { %5562 = vmatprep.subr.bf16.mxu0 %v6500_v5 }
 0x29e   :  { %5563 = vmatpush3.bf16.msra.mxu0 %v6501_v12 }
 0x29f   :  { %5564 = vmatprep.subr.bf16.mxu0 %v6502_v19 }
 0x2a2   :  { %5565 = vmatpush3.bf16.msra.mxu0 %v6503_v8 }
 0x2a3   :  { %5566 = vmatprep.subr.bf16.mxu0 %v6504_v51 }
 0x2a6   :  { %5567 = vmatpush3.bf16.msra.mxu0 %v6505_v50 }
 0x2a7   :  { %5568 = vmatprep.subr.bf16.mxu0 %v6506_v27 }
 0x2aa   :  { %5569 = vmatpush3.bf16.msra.mxu0 %v6507_v47 }
 0x2ab   :  { %5570 = vmatprep.subr.bf16.mxu0 %v6508_v28 }
 0x2ae   :  { %5571 = vmatpush3.bf16.msra.mxu0 %v6509_v29 }
 0x2af   :  { %5572 = vmatprep.subr.bf16.mxu0 %v6510_v30 }
 0x2b2   :  { %5573 = vmatpush3.bf16.msra.mxu0 %v6511_v31 }
 0x2b5   :  { %v4134_v9 = vpop.f32.mrf.mxu0 }
 0x2b6   :  { %v4175_v11 = vpop.f32.mrf.mxu1  ;;  %v4135_v13 = vadd.f32 %v4134_v9, %v675_v48 }
 0x2b7   :  { %v4136_v15 = vpop.f32.mrf.mxu0 }
 0x2b8   :  { %v4177_v23 = vpop.f32.mrf.mxu1  ;;  %v4176_v24 = vadd.f32 %v4175_v11, %v4135_v13  ;;  %v4137_v25 = vadd.f32 %v4136_v15, %v679_v18 }
 0x2b9   :  { %v4138_v20 = vpop.f32.mrf.mxu0 }
 0x2ba   :  { %v4179_v21 = vpop.f32.mrf.mxu1  ;;  %v4178_v44 = vadd.f32 %v4177_v23, %v4137_v25 }
 0x2bb   :  { %v4139_v0 = vpop.f32.mrf.mxu0 }
 0x2bc   :  { %v4180_v26 = vpop.f32.mrf.mxu1 }
 0x2f5   :  { %v4216_v34 = vpop.f32.mrf.mxu0 }
 0x2f6   :  { %v4257_v35 = vpop.f32.mrf.mxu1  ;;  %v4217_v1 = vadd.f32 %v4216_v34, %v4176_v24 }
 0x2f7   :  { %v4218_v32 = vpop.f32.mrf.mxu0 }
 0x2f8   :  { %v4259_v33 = vpop.f32.mrf.mxu1  ;;  %v4258_v38 = vadd.f32 %v4257_v35, %v4217_v1  ;;  %v4219_v22 = vadd.f32 %v4218_v32, %v4178_v44 }
 0x2f9   :  { %v4220_v39 = vpop.f32.mrf.mxu0 }
 0x2fa   :  { %v4261_v40 = vpop.f32.mrf.mxu1  ;;  %v4260_v46 = vadd.f32 %v4259_v33, %v4219_v22 }
 0x2fb   :  { %v4221_v41 = vpop.f32.mrf.mxu0 }
 0x2fc   :  { %v4262_v42 = vpop.f32.mrf.mxu1 }
 0x335   :  { %v4298_v43 = vpop.f32.mrf.mxu0 }
 0x336   :  { %v4339_v45 = vpop.f32.mrf.mxu1  ;;  %v4299_v4 = vadd.f32 %v4298_v43, %v4258_v38 }
 0x337   :  { %v4300_v49 = vpop.f32.mrf.mxu0 }
 0x338   :  { %v4341_v6 = vpop.f32.mrf.mxu1  ;;  %v4340_v7 = vadd.f32 %v4339_v45, %v4299_v4  ;;  %v4301_v52 = vadd.f32 %v4300_v49, %v4260_v46 }
 0x339   :  { %v4302_v53 = vpop.f32.mrf.mxu0 }
 0x33a   :  { %v4343_v54 = vpop.f32.mrf.mxu1  ;;  %v4342_v55 = vadd.f32 %v4341_v6, %v4301_v52  ;;  %6520 = vtanh.f32 %v4340_v7 }
 0x33b   :  { %v4303_v14 = vpop.f32.mrf.mxu0 }
 0x33c   :  { %v4344_v10 = vpop.f32.mrf.mxu1  ;;  %6522 = vtanh.f32 %v4342_v55 }
 0x347   :  { %v6521_v56 = vpop.eup %6520 }
 0x348   :  { %v4356_v37 = vpack.c.bf16 %v6521_v56, %v6521_v56 }
 0x349   :  { %v6523_v57 = vpop.eup %6522 }
 0x34a   :  { %v4357_v36 = vpack.c.bf16 %v6523_v57, %v6523_v57 }
 0x34c   :  { %4861 = vmatprep.mubr.bf16.mxu0 %v4357_v36 }
 0x34d   :  { %4862 = vmatmul.mubr.bf16.vlgmr.msra.gmra.mxu0 %v4356_v37 }
 0x355   :  { %v5530_v58 = vpop.f32.mrf.mxu0 }
 0x356   :  { %v5552_v59 = vpop.f32.mrf.mxu1 }
 0x357   :  { %v5531_v61 = vpop.f32.mrf.mxu0 }
 0x358   :  { %v5532_v62 = vadd.f32 %v5531_v61, %v5530_v58  ;;  %v5553_v63 = vpop.f32.mrf.mxu1 }
 0x359   :  { %v5554_v2 = vadd.f32 %v5553_v63, %v5552_v59  ;;  %v5533_v3 = vpop.f32.mrf.mxu0 }
 0x35a   :  { %v4784_v16 = vadd.f32 %v5532_v62, %v5465_v60  ;;  %v5555_v17 = vpop.f32.mrf.mxu1 }
 0x35b   :  { %v5534_v48 = vpop.f32.mrf.mxu0 }
 0x35c   :  { %v4824_v18 = vadd.f32 %v5554_v2, %v4784_v16  ;;  %v5556_v5 = vpop.f32.mrf.mxu1 }
 0x40d   :  { %v5574_v9 = vpop.f32.mrf.mxu0 }
 0x40f   :  { %v5575_v11 = vpop.f32.mrf.mxu0 }
 0x410   :  { %v5576_v12 = vadd.f32 %v5575_v11, %v5574_v9 }
 0x411   :  { %v5577_v13 = vpop.f32.mrf.mxu0 }
 0x412   :  { %v4864_v15 = vadd.f32 %v5576_v12, %v4824_v18 }
 0x413   :  { %v5578_v23 = vpop.f32.mrf.mxu0 }
 0x414   :  { %4869 = vst [vmem:[%s6818_s5] sm:$0xff] %v4864_v15 }
 0x415   :  { %4874 = vsyncpa [#allocation3], 1 }
 0x416   :  { %4875 = vsyncpa [#allocation5], 1 }
 0x417   :  { %4876 = vsyncpa [#allocation8], 1 }

</bundles_post_ra>
